<compile_context>
chip_gen: v6e
topology: v6e:2x2x1
jax: 0.10.0
libtpu: 0.0.40
codegen_flags: <defaults>
</compile_context>

<pallas_src>
import functools

import jax
import jax.numpy as jnp
from jax.experimental import pallas as pl
from jax.experimental.pallas import tpu as pltpu

SEQ, BATCH, EMB, NHEADS, FFN = 8, 2, 32, 4, 64
HEAD_DIM = EMB // NHEADS
LN_EPS = 1e-5


# ----------------------------- kernel helpers ------------------------------
def _erf(z):
    # Abramowitz & Stegun 7.1.26 polynomial, |err| < 1.5e-7 (f32-exact).
    a1, a2, a3, a4, a5 = 0.254829592, -0.284496736, 1.421413741, -1.453152027, 1.061405429
    p = 0.3275911
    s = jnp.where(z >= 0.0, 1.0, -1.0)
    az = jnp.abs(z)
    t = pl.reciprocal(1.0 + p * az, approx=False)     # EUP, off the VALU
    poly = ((((a5 * t + a4) * t + a3) * t + a2) * t + a1) * t
    return s * (1.0 - poly * jnp.exp(-az * az))


def _gelu_exact(v):
    # PyTorch nn.GELU() default ('none') = exact erf formulation.
    return 0.5 * v * (1.0 + _erf(v * 0.7071067811865476))


def _layer_norm(v, g, b):
    mu = jnp.mean(v, axis=-1, keepdims=True)
    d = v - mu
    var = jnp.mean(d * d, axis=-1, keepdims=True)
    return d * jax.lax.rsqrt(var + LN_EPS) * g + b


# ------------------------- shared per-sequence body -------------------------
def _encoder_body(x, ln, w_qkv, b_qkv, w_out, b_out, w1, b1, w2, b2,
                  *, nheads, head_dim):
    """x: (S, E) f32. ln: (4, E) = [ln1_g, ln1_b, ln2_g, ln2_b]."""
    # ---- pre-LN #1 + fused, head-batched QKV projection ----
    xn = _layer_norm(x, ln[0:1, :], ln[1:2, :])                       # (S, E)
    xh = jnp.broadcast_to(xn, (nheads,) + xn.shape)                   # (H, S, E)
    qkv = jnp.einsum('hse,hef->hsf', xh, w_qkv,
                     preferred_element_type=jnp.float32) + b_qkv      # (H, S, 3Dh)
    q = qkv[..., :head_dim]                # 1/sqrt(Dh) pre-folded into Wq/bq
    k = qkv[..., head_dim:2 * head_dim]
    v = qkv[..., 2 * head_dim:]

    # ---- attention, batched over heads ----
    s = jnp.einsum('hsd,htd->hst', q, k, preferred_element_type=jnp.float32)
    s = s - jnp.max(s, axis=-1, keepdims=True)
    p = jnp.exp(s)
    p = p * pl.reciprocal(jnp.sum(p, axis=-1, keepdims=True), approx=False)
    ctx = jnp.einsum('hst,htd->hsd', p, v, preferred_element_type=jnp.float32)

    # ---- output projection: per-head partial matmuls summed over heads ----
    attn = jnp.einsum('hsd,hde->hse', ctx, w_out,
                      preferred_element_type=jnp.float32)             # (H, S, E)
    attn = jnp.sum(attn, axis=0) + b_out                              # (S, E)
    x = x + attn                      # dropout1 == identity at inference

    # ---- pre-LN #2 + MLP ----
    xn2 = _layer_norm(x, ln[2:3, :], ln[3:4, :])
    h1 = jnp.dot(xn2, w1, preferred_element_type=jnp.float32) + b1
    h1 = _gelu_exact(h1)
    h2 = jnp.dot(h1, w2, preferred_element_type=jnp.float32) + b2
    return x + h2                     # dropout2 == identity at inference


# --------------------------------- kernels ----------------------------------
def _folded_kernel(x_ref, ln_ref, wqkv_ref, bqkv_ref, wo_ref, bo_ref,
                   w1_ref, b1_ref, w2_ref, b2_ref, o_ref,
                   *, nheads, head_dim, batch):
    """Single-TC path: whole (S, B, E) array in one invocation, no transposes."""
    x = x_ref[...]                                                    # (S, B, E)
    args = (ln_ref[...], wqkv_ref[...], bqkv_ref[...], wo_ref[...], bo_ref[...],
            w1_ref[...], b1_ref[...], w2_ref[...], b2_ref[...])
    outs = [_encoder_body(x[:, bi, :], *args, nheads=nheads, head_dim=head_dim)
            for bi in range(batch)]                                   # static unroll
    o_ref[...] = jnp.stack(outs, axis=1)                              # (S, B, E)


def _sharded_kernel(x_ref, ln_ref, wqkv_ref, bqkv_ref, wo_ref, bo_ref,
                    w1_ref, b1_ref, w2_ref, b2_ref, o_ref,
                    *, nheads, head_dim):
    """Multi-TC path (v7x): one batch item per grid step / per TensorCore."""
    args = (ln_ref[...], wqkv_ref[...], bqkv_ref[...], wo_ref[...], bo_ref[...],
            w1_ref[...], b1_ref[...], w2_ref[...], b2_ref[...])
    o_ref[0] = _encoder_body(x_ref[0], *args, nheads=nheads, head_dim=head_dim)


# -------------------------------- wrapper ------------------------------------
def _multi_tensorcore_chip():
    try:
        kind = jax.devices()[0].device_kind.lower()
    except Exception:
        return False
    # v7x (2 TCs/chip) and v4 (megacore) benefit from a parallel batch grid.
    return ("v7" in kind) or ("7x" in kind) or ("v4" in kind)


def _pack_params(params):
    """Repack PyTorch-layout params into kernel-friendly operands (10 arrays)."""
    (ln1_g, ln1_b, in_w, in_b, out_w, out_b,
     ln2_g, ln2_b, fc1_w, fc1_b, fc2_w, fc2_b) = params
    E, H, Dh = EMB, NHEADS, HEAD_DIM
    scale = 1.0 / (Dh ** 0.5)

    def per_head(w):                       # (E_out, E_in) -> (H, E_in, Dh)
        return jnp.transpose(w.reshape(H, Dh, E), (0, 2, 1))

    wq, wk, wv = in_w[:E], in_w[E:2 * E], in_w[2 * E:]
    bq, bk, bv = in_b[:E], in_b[E:2 * E], in_b[2 * E:]
    # Fused, head-batched QKV: softmax scale folded into Wq / bq here (param
    # packing, done once — not an activation pre-scale).
    w_qkv = jnp.concatenate([per_head(wq) * scale, per_head(wk), per_head(wv)],
                            axis=-1)                                  # (H, E, 3Dh)
    b_qkv = jnp.concatenate([(bq * scale).reshape(H, 1, Dh),
                             bk.reshape(H, 1, Dh),
                             bv.reshape(H, 1, Dh)], axis=-1)          # (H, 1, 3Dh)
    w_out = out_w.T.reshape(H, Dh, E)                                 # (H, Dh, E)
    b_out = out_b[None]                                               # (1, E)
    ln = jnp.stack([ln1_g, ln1_b, ln2_g, ln2_b], axis=0)              # (4, E)
    w1, b1 = fc1_w.T, fc1_b[None]                                     # (E,F),(1,F)
    w2, b2 = fc2_w.T, fc2_b[None]                                     # (F,E),(1,E)
    return (ln, w_qkv, b_qkv, w_out, b_out, w1, b1, w2, b2)


@jax.jit
def transformer_encoder_layer(x_sbe, params):
    """x_sbe: (seq, batch, emb) float32, PyTorch MultiheadAttention layout."""
    S, B, E = x_sbe.shape
    packed = _pack_params(params)

    def const_spec(a):
        nd = a.ndim
        return pl.BlockSpec(a.shape, lambda *_, _nd=nd: (0,) * _nd)

    param_specs = [const_spec(a) for a in packed]

    if _multi_tensorcore_chip() and B > 1:
        # --- v7x: shard batch over the two TensorCores (parallel grid) ---
        x_bse = jnp.transpose(x_sbe, (1, 0, 2))                       # (B, S, E)
        kernel = functools.partial(_sharded_kernel,
                                   nheads=NHEADS, head_dim=HEAD_DIM)
        out = pl.pallas_call(
            kernel,
            out_shape=jax.ShapeDtypeStruct((B, S, E), x_sbe.dtype),
            grid_spec=pltpu.PrefetchScalarGridSpec(
                num_scalar_prefetch=0,
                grid=(B,),
                in_specs=[pl.BlockSpec((1, S, E), lambda b: (b, 0, 0))]
                         + param_specs,
                out_specs=pl.BlockSpec((1, S, E), lambda b: (b, 0, 0)),
            ),
            compiler_params=pltpu.CompilerParams(
                dimension_semantics=("parallel",)),
        )(x_bse, *packed)
        return jnp.transpose(out, (1, 0, 2))                          # (S, B, E)

    # --- v5e / v6e (single TC): one invocation, no transposes, no batch grid ---
    kernel = functools.partial(_folded_kernel,
                               nheads=NHEADS, head_dim=HEAD_DIM, batch=B)
    return pl.pallas_call(
        kernel,
        out_shape=jax.ShapeDtypeStruct((S, B, E), x_sbe.dtype),
        grid_spec=pltpu.PrefetchScalarGridSpec(
            num_scalar_prefetch=0,
            grid=(1,),
            in_specs=[pl.BlockSpec((S, B, E), lambda i: (0, 0, 0))]
                     + param_specs,
            out_specs=pl.BlockSpec((S, B, E), lambda i: (0, 0, 0)),
        ),
        compiler_params=pltpu.CompilerParams(
            dimension_semantics=("arbitrary",)),
    )(x_sbe, *packed)


# ------------------------- pure-JAX reference (check) -----------------------
def reference(x_sbe, params):
    from jax.scipy.special import erf
    (ln1_g, ln1_b, in_w, in_b, out_w, out_b,
     ln2_g, ln2_b, fc1_w, fc1_b, fc2_w, fc2_b) = params
    E = x_sbe.shape[-1]

    def ln(v, g, b):
        mu = jnp.mean(v, -1, keepdims=True)
        var = jnp.mean((v - mu) ** 2, -1, keepdims=True)
        return (v - mu) / jnp.sqrt(var + LN_EPS) * g + b

    x = jnp.transpose(x_sbe, (1, 0, 2))
    B, S, _ = x.shape
    xn = ln(x, ln1_g, ln1_b)
    qkv = jnp.einsum('bse,fe->bsf', xn, in_w) + in_b
    q, k, v = qkv[..., :E], qkv[..., E:2 * E], qkv[..., 2 * E:]
    q = q.reshape(B, S, NHEADS, HEAD_DIM) / (HEAD_DIM ** 0.5)
    k = k.reshape(B, S, NHEADS, HEAD_DIM)
    v = v.reshape(B, S, NHEADS, HEAD_DIM)
    p = jax.nn.softmax(jnp.einsum('bqhd,bkhd->bhqk', q, k), -1)
    o = jnp.einsum('bhqk,bkhd->bqhd', p, v).reshape(B, S, E)
    x = x + jnp.einsum('bse,fe->bsf', o, out_w) + out_b
    xn2 = ln(x, ln2_g, ln2_b)
    h = jnp.einsum('bse,fe->bsf', xn2, fc1_w) + fc1_b
    h = 0.5 * h * (1.0 + erf(h / jnp.sqrt(2.0)))
    x = x + jnp.einsum('bsf,ef->bse', h, fc2_w) + fc2_b
    return jnp.transpose(x, (1, 0, 2))


# ---------------------------------- main -------------------------------------
if __name__ == "__main__":
    key = jax.random.PRNGKey(0)
    ks = jax.random.split(key, 8)
    x = jax.random.normal(ks[0], (SEQ, BATCH, EMB), jnp.float32)

    params = (
        jnp.ones((EMB,), jnp.float32),                                  # ln1.weight
        jnp.zeros((EMB,), jnp.float32),                                 # ln1.bias
        0.05 * jax.random.normal(ks[1], (3 * EMB, EMB), jnp.float32),   # mha.in_proj_weight
        0.05 * jax.random.normal(ks[2], (3 * EMB,), jnp.float32),       # mha.in_proj_bias
        0.05 * jax.random.normal(ks[3], (EMB, EMB), jnp.float32),       # mha.out_proj.weight
        jnp.zeros((EMB,), jnp.float32),                                 # mha.out_proj.bias
        jnp.ones((EMB,), jnp.float32),                                  # ln2.weight
        jnp.zeros((EMB,), jnp.float32),                                 # ln2.bias
        0.05 * jax.random.normal(ks[4], (FFN, EMB), jnp.float32),       # mlp.fc1.weight
        0.05 * jax.random.normal(ks[5], (FFN,), jnp.float32),           # mlp.fc1.bias
        0.05 * jax.random.normal(ks[6], (EMB, FFN), jnp.float32),       # mlp.fc2.weight
        0.05 * jax.random.normal(ks[7], (EMB,), jnp.float32),           # mlp.fc2.bias
    )

    out = jax.block_until_ready(transformer_encoder_layer(x, params))
    ref = reference(x, params)

    assert out.shape == x.shape
    max_err = float(jnp.max(jnp.abs(out - ref)))
    assert max_err < 5e-4, f"max abs err {max_err}"
    print("KERNEL_OK")
</pallas_src>

<mosaic_0001>
module attributes {stable_mosaic.version = 11 : i64} {
  func.func @_folded_kernel(%arg0: i32, %arg1: memref<8x2x32xf32, #tpu.memory_space<vmem>>, %arg2: memref<4x32xf32, #tpu.memory_space<vmem>>, %arg3: memref<4x32x24xf32, #tpu.memory_space<vmem>>, %arg4: memref<4x1x24xf32, #tpu.memory_space<vmem>>, %arg5: memref<4x8x32xf32, #tpu.memory_space<vmem>>, %arg6: memref<1x32xf32, #tpu.memory_space<vmem>>, %arg7: memref<32x64xf32, #tpu.memory_space<vmem>>, %arg8: memref<1x64xf32, #tpu.memory_space<vmem>>, %arg9: memref<64x32xf32, #tpu.memory_space<vmem>>, %arg10: memref<1x32xf32, #tpu.memory_space<vmem>>, %arg11: memref<8x2x32xf32, #tpu.memory_space<vmem>>) attributes {dimension_semantics = [#tpu.dimension_semantics<arbitrary>], iteration_bounds = array<i64: 1>, scalar_prefetch = 0 : i64, scratch_operands = 0 : i64, tpu.core_type = #tpu.core_type<tc>, window_params = [{pipeline_mode = #tpu.pipeline_mode<synchronous>, transform_indices = @transform_0, window_bounds = array<i64: 8, 2, 32>}, {pipeline_mode = #tpu.pipeline_mode<synchronous>, transform_indices = @transform_1, window_bounds = array<i64: 4, 32>}, {pipeline_mode = #tpu.pipeline_mode<synchronous>, transform_indices = @transform_2, window_bounds = array<i64: 4, 32, 24>}, {pipeline_mode = #tpu.pipeline_mode<synchronous>, transform_indices = @transform_3, window_bounds = array<i64: 4, 1, 24>}, {pipeline_mode = #tpu.pipeline_mode<synchronous>, transform_indices = @transform_4, window_bounds = array<i64: 4, 8, 32>}, {pipeline_mode = #tpu.pipeline_mode<synchronous>, transform_indices = @transform_5, window_bounds = array<i64: 1, 32>}, {pipeline_mode = #tpu.pipeline_mode<synchronous>, transform_indices = @transform_6, window_bounds = array<i64: 32, 64>}, {pipeline_mode = #tpu.pipeline_mode<synchronous>, transform_indices = @transform_7, window_bounds = array<i64: 1, 64>}, {pipeline_mode = #tpu.pipeline_mode<synchronous>, transform_indices = @transform_8, window_bounds = array<i64: 64, 32>}, {pipeline_mode = #tpu.pipeline_mode<synchronous>, transform_indices = @transform_9, window_bounds = array<i64: 1, 32>}, {pipeline_mode = #tpu.pipeline_mode<synchronous>, transform_indices = @transform_10, window_bounds = array<i64: 8, 2, 32>}]} {
    %c0 = arith.constant 0 : index
    %c0_0 = arith.constant 0 : index
    %c0_1 = arith.constant 0 : index
    %0 = vector.load %arg1[%c0, %c0_0, %c0_1] : memref<8x2x32xf32, #tpu.memory_space<vmem>>, vector<8x2x32xf32>
    %c0_2 = arith.constant 0 : index
    %c0_3 = arith.constant 0 : index
    %1 = vector.load %arg2[%c0_2, %c0_3] : memref<4x32xf32, #tpu.memory_space<vmem>>, vector<4x32xf32>
    %c0_4 = arith.constant 0 : index
    %c0_5 = arith.constant 0 : index
    %c0_6 = arith.constant 0 : index
    %2 = vector.load %arg3[%c0_4, %c0_5, %c0_6] : memref<4x32x24xf32, #tpu.memory_space<vmem>>, vector<4x32x24xf32>
    %c0_7 = arith.constant 0 : index
    %c0_8 = arith.constant 0 : index
    %c0_9 = arith.constant 0 : index
    %3 = vector.load %arg4[%c0_7, %c0_8, %c0_9] : memref<4x1x24xf32, #tpu.memory_space<vmem>>, vector<4x1x24xf32>
    %c0_10 = arith.constant 0 : index
    %c0_11 = arith.constant 0 : index
    %c0_12 = arith.constant 0 : index
    %4 = vector.load %arg5[%c0_10, %c0_11, %c0_12] : memref<4x8x32xf32, #tpu.memory_space<vmem>>, vector<4x8x32xf32>
    %c0_13 = arith.constant 0 : index
    %c0_14 = arith.constant 0 : index
    %5 = vector.load %arg6[%c0_13, %c0_14] : memref<1x32xf32, #tpu.memory_space<vmem>>, vector<1x32xf32>
    %c0_15 = arith.constant 0 : index
    %c0_16 = arith.constant 0 : index
    %6 = vector.load %arg7[%c0_15, %c0_16] : memref<32x64xf32, #tpu.memory_space<vmem>>, vector<32x64xf32>
    %c0_17 = arith.constant 0 : index
    %c0_18 = arith.constant 0 : index
    %7 = vector.load %arg8[%c0_17, %c0_18] : memref<1x64xf32, #tpu.memory_space<vmem>>, vector<1x64xf32>
    %c0_19 = arith.constant 0 : index
    %c0_20 = arith.constant 0 : index
    %8 = vector.load %arg9[%c0_19, %c0_20] : memref<64x32xf32, #tpu.memory_space<vmem>>, vector<64x32xf32>
    %c0_21 = arith.constant 0 : index
    %c0_22 = arith.constant 0 : index
    %9 = vector.load %arg10[%c0_21, %c0_22] : memref<1x32xf32, #tpu.memory_space<vmem>>, vector<1x32xf32>
    %10 = vector.extract_strided_slice %0 {offsets = [0, 0, 0], sizes = [8, 1, 32], strides = [1, 1, 1]} : vector<8x2x32xf32> to vector<8x1x32xf32>
    %11 = vector.shape_cast %10 : vector<8x1x32xf32> to vector<8x32xf32>
    %12 = vector.extract_strided_slice %1 {offsets = [0, 0], sizes = [1, 32], strides = [1, 1]} : vector<4x32xf32> to vector<1x32xf32>
    %13 = vector.extract_strided_slice %1 {offsets = [1, 0], sizes = [1, 32], strides = [1, 1]} : vector<4x32xf32> to vector<1x32xf32>
    %cst = arith.constant dense<0.000000e+00> : vector<8xf32>
    %14 = vector.multi_reduction <add>, %11, %cst [1] : vector<8x32xf32> to vector<8xf32>
    %15 = vector.shape_cast %14 : vector<8xf32> to vector<8x1xf32>
    %cst_23 = arith.constant 3.200000e+01 : f32
    %16 = vector.broadcast %cst_23 : f32 to vector<8x1xf32>
    %17 = arith.divf %15, %16 : vector<8x1xf32>
    %18 = vector.broadcast %17 : vector<8x1xf32> to vector<8x32xf32>
    %19 = arith.subf %11, %18 : vector<8x32xf32>
    %20 = arith.mulf %19, %19 : vector<8x32xf32>
    %cst_24 = arith.constant dense<0.000000e+00> : vector<8xf32>
    %21 = vector.multi_reduction <add>, %20, %cst_24 [1] : vector<8x32xf32> to vector<8xf32>
    %22 = vector.shape_cast %21 : vector<8xf32> to vector<8x1xf32>
    %cst_25 = arith.constant 3.200000e+01 : f32
    %23 = vector.broadcast %cst_25 : f32 to vector<8x1xf32>
    %24 = arith.divf %22, %23 : vector<8x1xf32>
    %cst_26 = arith.constant 9.99999974E-6 : f32
    %25 = vector.broadcast %cst_26 : f32 to vector<8x1xf32>
    %26 = arith.addf %24, %25 : vector<8x1xf32>
    %27 = math.rsqrt %26 : vector<8x1xf32>
    %28 = vector.broadcast %27 : vector<8x1xf32> to vector<8x32xf32>
    %29 = arith.mulf %19, %28 : vector<8x32xf32>
    %30 = vector.broadcast %12 : vector<1x32xf32> to vector<8x32xf32>
    %31 = arith.mulf %29, %30 : vector<8x32xf32>
    %32 = vector.broadcast %13 : vector<1x32xf32> to vector<8x32xf32>
    %33 = arith.addf %31, %32 : vector<8x32xf32>
    %34 = vector.shape_cast %33 : vector<8x32xf32> to vector<1x8x32xf32>
    %35 = vector.broadcast %34 : vector<1x8x32xf32> to vector<4x8x32xf32>
    "tpu.trace_start"() <{level = 10 : i32, message = "hse,hef->hsf"}> : () -> ()
    %cst_27 = arith.constant dense<0.000000e+00> : vector<4x8x24xf32>
    %36 = tpu.matmul %35, %2, %cst_27 {dimension_numbers = #tpu.dot_dimension_numbers<[2], [1], [1], [2], [0, 0, 0, 1, 1, 2], [0], [0]>} : vector<4x8x32xf32>, vector<4x32x24xf32>, vector<4x8x24xf32> -> vector<4x8x24xf32>
    "tpu.trace_stop"() : () -> ()
    %37 = vector.broadcast %3 : vector<4x1x24xf32> to vector<4x8x24xf32>
    %38 = arith.addf %36, %37 : vector<4x8x24xf32>
    %39 = vector.extract_strided_slice %38 {offsets = [0, 0, 0], sizes = [4, 8, 8], strides = [1, 1, 1]} : vector<4x8x24xf32> to vector<4x8x8xf32>
    %40 = vector.extract_strided_slice %38 {offsets = [0, 0, 8], sizes = [4, 8, 8], strides = [1, 1, 1]} : vector<4x8x24xf32> to vector<4x8x8xf32>
    %41 = vector.extract_strided_slice %38 {offsets = [0, 0, 16], sizes = [4, 8, 8], strides = [1, 1, 1]} : vector<4x8x24xf32> to vector<4x8x8xf32>
    "tpu.trace_start"() <{level = 10 : i32, message = "hsd,htd->hst"}> : () -> ()
    %cst_28 = arith.constant dense<0.000000e+00> : vector<4x8x8xf32>
    %42 = tpu.matmul %39, %40, %cst_28 {dimension_numbers = #tpu.dot_dimension_numbers<[2], [2], [1], [1], [0, 0, 0, 1, 1, 1], [0], [0]>} : vector<4x8x8xf32>, vector<4x8x8xf32>, vector<4x8x8xf32> -> vector<4x8x8xf32>
    "tpu.trace_stop"() : () -> ()
    %cst_29 = arith.constant dense<0xFF800000> : vector<4x8xf32>
    %43 = vector.multi_reduction <maximumf>, %42, %cst_29 [2] : vector<4x8x8xf32> to vector<4x8xf32>
    %44 = vector.shape_cast %43 : vector<4x8xf32> to vector<4x8x1xf32>
    %45 = vector.broadcast %44 : vector<4x8x1xf32> to vector<4x8x8xf32>
    %46 = arith.subf %42, %45 : vector<4x8x8xf32>
    %47 = math.exp %46 : vector<4x8x8xf32>
    %cst_30 = arith.constant dense<0.000000e+00> : vector<4x8xf32>
    %48 = vector.multi_reduction <add>, %47, %cst_30 [2] : vector<4x8x8xf32> to vector<4x8xf32>
    %49 = vector.shape_cast %48 : vector<4x8xf32> to vector<4x8x1xf32>
    %50 = tpu.reciprocal %49 : vector<4x8x1xf32> -> vector<4x8x1xf32>
    %51 = vector.broadcast %50 : vector<4x8x1xf32> to vector<4x8x8xf32>
    %52 = arith.mulf %47, %51 : vector<4x8x8xf32>
    "tpu.trace_start"() <{level = 10 : i32, message = "hst,htd->hsd"}> : () -> ()
    %cst_31 = arith.constant dense<0.000000e+00> : vector<4x8x8xf32>
    %53 = tpu.matmul %52, %41, %cst_31 {dimension_numbers = #tpu.dot_dimension_numbers<[2], [1], [1], [2], [0, 0, 0, 1, 1, 2], [0], [0]>} : vector<4x8x8xf32>, vector<4x8x8xf32>, vector<4x8x8xf32> -> vector<4x8x8xf32>
    "tpu.trace_stop"() : () -> ()
    "tpu.trace_start"() <{level = 10 : i32, message = "hsd,hde->hse"}> : () -> ()
    %cst_32 = arith.constant dense<0.000000e+00> : vector<4x8x32xf32>
    %54 = tpu.matmul %53, %4, %cst_32 {dimension_numbers = #tpu.dot_dimension_numbers<[2], [1], [1], [2], [0, 0, 0, 1, 1, 2], [0], [0]>} : vector<4x8x8xf32>, vector<4x8x32xf32>, vector<4x8x32xf32> -> vector<4x8x32xf32>
    "tpu.trace_stop"() : () -> ()
    %cst_33 = arith.constant dense<0.000000e+00> : vector<8x32xf32>
    %55 = vector.multi_reduction <add>, %54, %cst_33 [0] : vector<4x8x32xf32> to vector<8x32xf32>
    %56 = vector.broadcast %5 : vector<1x32xf32> to vector<8x32xf32>
    %57 = arith.addf %55, %56 : vector<8x32xf32>
    %58 = arith.addf %11, %57 : vector<8x32xf32>
    %59 = vector.extract_strided_slice %1 {offsets = [2, 0], sizes = [1, 32], strides = [1, 1]} : vector<4x32xf32> to vector<1x32xf32>
    %60 = vector.extract_strided_slice %1 {offsets = [3, 0], sizes = [1, 32], strides = [1, 1]} : vector<4x32xf32> to vector<1x32xf32>
    %cst_34 = arith.constant dense<0.000000e+00> : vector<8xf32>
    %61 = vector.multi_reduction <add>, %58, %cst_34 [1] : vector<8x32xf32> to vector<8xf32>
    %62 = vector.shape_cast %61 : vector<8xf32> to vector<8x1xf32>
    %cst_35 = arith.constant 3.200000e+01 : f32
    %63 = vector.broadcast %cst_35 : f32 to vector<8x1xf32>
    %64 = arith.divf %62, %63 : vector<8x1xf32>
    %65 = vector.broadcast %64 : vector<8x1xf32> to vector<8x32xf32>
    %66 = arith.subf %58, %65 : vector<8x32xf32>
    %67 = arith.mulf %66, %66 : vector<8x32xf32>
    %cst_36 = arith.constant dense<0.000000e+00> : vector<8xf32>
    %68 = vector.multi_reduction <add>, %67, %cst_36 [1] : vector<8x32xf32> to vector<8xf32>
    %69 = vector.shape_cast %68 : vector<8xf32> to vector<8x1xf32>
    %cst_37 = arith.constant 3.200000e+01 : f32
    %70 = vector.broadcast %cst_37 : f32 to vector<8x1xf32>
    %71 = arith.divf %69, %70 : vector<8x1xf32>
    %cst_38 = arith.constant 9.99999974E-6 : f32
    %72 = vector.broadcast %cst_38 : f32 to vector<8x1xf32>
    %73 = arith.addf %71, %72 : vector<8x1xf32>
    %74 = math.rsqrt %73 : vector<8x1xf32>
    %75 = vector.broadcast %74 : vector<8x1xf32> to vector<8x32xf32>
    %76 = arith.mulf %66, %75 : vector<8x32xf32>
    %77 = vector.broadcast %59 : vector<1x32xf32> to vector<8x32xf32>
    %78 = arith.mulf %76, %77 : vector<8x32xf32>
    %79 = vector.broadcast %60 : vector<1x32xf32> to vector<8x32xf32>
    %80 = arith.addf %78, %79 : vector<8x32xf32>
    %cst_39 = arith.constant dense<0.000000e+00> : vector<8x64xf32>
    %81 = tpu.matmul %80, %6, %cst_39 {dimension_numbers = #tpu.dot_dimension_numbers<[1], [0], [0], [1], [0, 0, 1, 1], [], []>} : vector<8x32xf32>, vector<32x64xf32>, vector<8x64xf32> -> vector<8x64xf32>
    %82 = vector.broadcast %7 : vector<1x64xf32> to vector<8x64xf32>
    %83 = arith.addf %81, %82 : vector<8x64xf32>
    %cst_40 = arith.constant 5.000000e-01 : f32
    %84 = vector.broadcast %cst_40 : f32 to vector<8x64xf32>
    %85 = arith.mulf %84, %83 : vector<8x64xf32>
    %cst_41 = arith.constant 0.707106769 : f32
    %86 = vector.broadcast %cst_41 : f32 to vector<8x64xf32>
    %87 = arith.mulf %83, %86 : vector<8x64xf32>
    %cst_42 = arith.constant 0.000000e+00 : f32
    %88 = vector.broadcast %cst_42 : f32 to vector<8x64xf32>
    %89 = arith.cmpf oge, %87, %88 : vector<8x64xf32>
    %cst_43 = arith.constant 1.000000e+00 : f32
    %cst_44 = arith.constant -1.000000e+00 : f32
    %90 = vector.broadcast %cst_43 : f32 to vector<8x64xf32>
    %91 = vector.broadcast %cst_44 : f32 to vector<8x64xf32>
    %92 = arith.select %89, %90, %91 : vector<8x64xi1>, vector<8x64xf32>
    %93 = math.absf %87 : vector<8x64xf32>
    %cst_45 = arith.constant 0.327591091 : f32
    %94 = vector.broadcast %cst_45 : f32 to vector<8x64xf32>
    %95 = arith.mulf %94, %93 : vector<8x64xf32>
    %cst_46 = arith.constant 1.000000e+00 : f32
    %96 = vector.broadcast %cst_46 : f32 to vector<8x64xf32>
    %97 = arith.addf %96, %95 : vector<8x64xf32>
    %98 = tpu.reciprocal %97 : vector<8x64xf32> -> vector<8x64xf32>
    %cst_47 = arith.constant 1.06140542 : f32
    %99 = vector.broadcast %cst_47 : f32 to vector<8x64xf32>
    %100 = arith.mulf %99, %98 : vector<8x64xf32>
    %cst_48 = arith.constant -1.45315206 : f32
    %101 = vector.broadcast %cst_48 : f32 to vector<8x64xf32>
    %102 = arith.addf %100, %101 : vector<8x64xf32>
    %103 = arith.mulf %102, %98 : vector<8x64xf32>
    %cst_49 = arith.constant 1.42141378 : f32
    %104 = vector.broadcast %cst_49 : f32 to vector<8x64xf32>
    %105 = arith.addf %103, %104 : vector<8x64xf32>
    %106 = arith.mulf %105, %98 : vector<8x64xf32>
    %cst_50 = arith.constant -0.284496725 : f32
    %107 = vector.broadcast %cst_50 : f32 to vector<8x64xf32>
    %108 = arith.addf %106, %107 : vector<8x64xf32>
    %109 = arith.mulf %108, %98 : vector<8x64xf32>
    %cst_51 = arith.constant 0.254829586 : f32
    %110 = vector.broadcast %cst_51 : f32 to vector<8x64xf32>
    %111 = arith.addf %109, %110 : vector<8x64xf32>
    %112 = arith.mulf %111, %98 : vector<8x64xf32>
    %cst_52 = arith.constant 0.000000e+00 : f32
    %113 = vector.broadcast %cst_52 : f32 to vector<8x64xf32>
    %114 = arith.subf %113, %93 : vector<8x64xf32>
    %115 = arith.mulf %114, %93 : vector<8x64xf32>
    %116 = math.exp %115 : vector<8x64xf32>
    %117 = arith.mulf %112, %116 : vector<8x64xf32>
    %cst_53 = arith.constant 1.000000e+00 : f32
    %118 = vector.broadcast %cst_53 : f32 to vector<8x64xf32>
    %119 = arith.subf %118, %117 : vector<8x64xf32>
    %120 = arith.mulf %92, %119 : vector<8x64xf32>
    %cst_54 = arith.constant 1.000000e+00 : f32
    %121 = vector.broadcast %cst_54 : f32 to vector<8x64xf32>
    %122 = arith.addf %121, %120 : vector<8x64xf32>
    %123 = arith.mulf %85, %122 : vector<8x64xf32>
    %cst_55 = arith.constant dense<0.000000e+00> : vector<8x32xf32>
    %124 = tpu.matmul %123, %8, %cst_55 {dimension_numbers = #tpu.dot_dimension_numbers<[1], [0], [0], [1], [0, 0, 1, 1], [], []>} : vector<8x64xf32>, vector<64x32xf32>, vector<8x32xf32> -> vector<8x32xf32>
    %125 = vector.broadcast %9 : vector<1x32xf32> to vector<8x32xf32>
    %126 = arith.addf %124, %125 : vector<8x32xf32>
    %127 = arith.addf %58, %126 : vector<8x32xf32>
    %128 = vector.extract_strided_slice %0 {offsets = [0, 1, 0], sizes = [8, 1, 32], strides = [1, 1, 1]} : vector<8x2x32xf32> to vector<8x1x32xf32>
    %129 = vector.shape_cast %128 : vector<8x1x32xf32> to vector<8x32xf32>
    %130 = vector.extract_strided_slice %1 {offsets = [0, 0], sizes = [1, 32], strides = [1, 1]} : vector<4x32xf32> to vector<1x32xf32>
    %131 = vector.extract_strided_slice %1 {offsets = [1, 0], sizes = [1, 32], strides = [1, 1]} : vector<4x32xf32> to vector<1x32xf32>
    %cst_56 = arith.constant dense<0.000000e+00> : vector<8xf32>
    %132 = vector.multi_reduction <add>, %129, %cst_56 [1] : vector<8x32xf32> to vector<8xf32>
    %133 = vector.shape_cast %132 : vector<8xf32> to vector<8x1xf32>
    %cst_57 = arith.constant 3.200000e+01 : f32
    %134 = vector.broadcast %cst_57 : f32 to vector<8x1xf32>
    %135 = arith.divf %133, %134 : vector<8x1xf32>
    %136 = vector.broadcast %135 : vector<8x1xf32> to vector<8x32xf32>
    %137 = arith.subf %129, %136 : vector<8x32xf32>
    %138 = arith.mulf %137, %137 : vector<8x32xf32>
    %cst_58 = arith.constant dense<0.000000e+00> : vector<8xf32>
    %139 = vector.multi_reduction <add>, %138, %cst_58 [1] : vector<8x32xf32> to vector<8xf32>
    %140 = vector.shape_cast %139 : vector<8xf32> to vector<8x1xf32>
    %cst_59 = arith.constant 3.200000e+01 : f32
    %141 = vector.broadcast %cst_59 : f32 to vector<8x1xf32>
    %142 = arith.divf %140, %141 : vector<8x1xf32>
    %cst_60 = arith.constant 9.99999974E-6 : f32
    %143 = vector.broadcast %cst_60 : f32 to vector<8x1xf32>
    %144 = arith.addf %142, %143 : vector<8x1xf32>
    %145 = math.rsqrt %144 : vector<8x1xf32>
    %146 = vector.broadcast %145 : vector<8x1xf32> to vector<8x32xf32>
    %147 = arith.mulf %137, %146 : vector<8x32xf32>
    %148 = vector.broadcast %130 : vector<1x32xf32> to vector<8x32xf32>
    %149 = arith.mulf %147, %148 : vector<8x32xf32>
    %150 = vector.broadcast %131 : vector<1x32xf32> to vector<8x32xf32>
    %151 = arith.addf %149, %150 : vector<8x32xf32>
    %152 = vector.shape_cast %151 : vector<8x32xf32> to vector<1x8x32xf32>
    %153 = vector.broadcast %152 : vector<1x8x32xf32> to vector<4x8x32xf32>
    "tpu.trace_start"() <{level = 10 : i32, message = "hse,hef->hsf"}> : () -> ()
    %cst_61 = arith.constant dense<0.000000e+00> : vector<4x8x24xf32>
    %154 = tpu.matmul %153, %2, %cst_61 {dimension_numbers = #tpu.dot_dimension_numbers<[2], [1], [1], [2], [0, 0, 0, 1, 1, 2], [0], [0]>} : vector<4x8x32xf32>, vector<4x32x24xf32>, vector<4x8x24xf32> -> vector<4x8x24xf32>
    "tpu.trace_stop"() : () -> ()
    %155 = vector.broadcast %3 : vector<4x1x24xf32> to vector<4x8x24xf32>
    %156 = arith.addf %154, %155 : vector<4x8x24xf32>
    %157 = vector.extract_strided_slice %156 {offsets = [0, 0, 0], sizes = [4, 8, 8], strides = [1, 1, 1]} : vector<4x8x24xf32> to vector<4x8x8xf32>
    %158 = vector.extract_strided_slice %156 {offsets = [0, 0, 8], sizes = [4, 8, 8], strides = [1, 1, 1]} : vector<4x8x24xf32> to vector<4x8x8xf32>
    %159 = vector.extract_strided_slice %156 {offsets = [0, 0, 16], sizes = [4, 8, 8], strides = [1, 1, 1]} : vector<4x8x24xf32> to vector<4x8x8xf32>
    "tpu.trace_start"() <{level = 10 : i32, message = "hsd,htd->hst"}> : () -> ()
    %cst_62 = arith.constant dense<0.000000e+00> : vector<4x8x8xf32>
    %160 = tpu.matmul %157, %158, %cst_62 {dimension_numbers = #tpu.dot_dimension_numbers<[2], [2], [1], [1], [0, 0, 0, 1, 1, 1], [0], [0]>} : vector<4x8x8xf32>, vector<4x8x8xf32>, vector<4x8x8xf32> -> vector<4x8x8xf32>
    "tpu.trace_stop"() : () -> ()
    %cst_63 = arith.constant dense<0xFF800000> : vector<4x8xf32>
    %161 = vector.multi_reduction <maximumf>, %160, %cst_63 [2] : vector<4x8x8xf32> to vector<4x8xf32>
    %162 = vector.shape_cast %161 : vector<4x8xf32> to vector<4x8x1xf32>
    %163 = vector.broadcast %162 : vector<4x8x1xf32> to vector<4x8x8xf32>
    %164 = arith.subf %160, %163 : vector<4x8x8xf32>
    %165 = math.exp %164 : vector<4x8x8xf32>
    %cst_64 = arith.constant dense<0.000000e+00> : vector<4x8xf32>
    %166 = vector.multi_reduction <add>, %165, %cst_64 [2] : vector<4x8x8xf32> to vector<4x8xf32>
    %167 = vector.shape_cast %166 : vector<4x8xf32> to vector<4x8x1xf32>
    %168 = tpu.reciprocal %167 : vector<4x8x1xf32> -> vector<4x8x1xf32>
    %169 = vector.broadcast %168 : vector<4x8x1xf32> to vector<4x8x8xf32>
    %170 = arith.mulf %165, %169 : vector<4x8x8xf32>
    "tpu.trace_start"() <{level = 10 : i32, message = "hst,htd->hsd"}> : () -> ()
    %cst_65 = arith.constant dense<0.000000e+00> : vector<4x8x8xf32>
    %171 = tpu.matmul %170, %159, %cst_65 {dimension_numbers = #tpu.dot_dimension_numbers<[2], [1], [1], [2], [0, 0, 0, 1, 1, 2], [0], [0]>} : vector<4x8x8xf32>, vector<4x8x8xf32>, vector<4x8x8xf32> -> vector<4x8x8xf32>
    "tpu.trace_stop"() : () -> ()
    "tpu.trace_start"() <{level = 10 : i32, message = "hsd,hde->hse"}> : () -> ()
    %cst_66 = arith.constant dense<0.000000e+00> : vector<4x8x32xf32>
    %172 = tpu.matmul %171, %4, %cst_66 {dimension_numbers = #tpu.dot_dimension_numbers<[2], [1], [1], [2], [0, 0, 0, 1, 1, 2], [0], [0]>} : vector<4x8x8xf32>, vector<4x8x32xf32>, vector<4x8x32xf32> -> vector<4x8x32xf32>
    "tpu.trace_stop"() : () -> ()
    %cst_67 = arith.constant dense<0.000000e+00> : vector<8x32xf32>
    %173 = vector.multi_reduction <add>, %172, %cst_67 [0] : vector<4x8x32xf32> to vector<8x32xf32>
    %174 = vector.broadcast %5 : vector<1x32xf32> to vector<8x32xf32>
    %175 = arith.addf %173, %174 : vector<8x32xf32>
    %176 = arith.addf %129, %175 : vector<8x32xf32>
    %177 = vector.extract_strided_slice %1 {offsets = [2, 0], sizes = [1, 32], strides = [1, 1]} : vector<4x32xf32> to vector<1x32xf32>
    %178 = vector.extract_strided_slice %1 {offsets = [3, 0], sizes = [1, 32], strides = [1, 1]} : vector<4x32xf32> to vector<1x32xf32>
    %cst_68 = arith.constant dense<0.000000e+00> : vector<8xf32>
    %179 = vector.multi_reduction <add>, %176, %cst_68 [1] : vector<8x32xf32> to vector<8xf32>
    %180 = vector.shape_cast %179 : vector<8xf32> to vector<8x1xf32>
    %cst_69 = arith.constant 3.200000e+01 : f32
    %181 = vector.broadcast %cst_69 : f32 to vector<8x1xf32>
    %182 = arith.divf %180, %181 : vector<8x1xf32>
    %183 = vector.broadcast %182 : vector<8x1xf32> to vector<8x32xf32>
    %184 = arith.subf %176, %183 : vector<8x32xf32>
    %185 = arith.mulf %184, %184 : vector<8x32xf32>
    %cst_70 = arith.constant dense<0.000000e+00> : vector<8xf32>
    %186 = vector.multi_reduction <add>, %185, %cst_70 [1] : vector<8x32xf32> to vector<8xf32>
    %187 = vector.shape_cast %186 : vector<8xf32> to vector<8x1xf32>
    %cst_71 = arith.constant 3.200000e+01 : f32
    %188 = vector.broadcast %cst_71 : f32 to vector<8x1xf32>
    %189 = arith.divf %187, %188 : vector<8x1xf32>
    %cst_72 = arith.constant 9.99999974E-6 : f32
    %190 = vector.broadcast %cst_72 : f32 to vector<8x1xf32>
    %191 = arith.addf %189, %190 : vector<8x1xf32>
    %192 = math.rsqrt %191 : vector<8x1xf32>
    %193 = vector.broadcast %192 : vector<8x1xf32> to vector<8x32xf32>
    %194 = arith.mulf %184, %193 : vector<8x32xf32>
    %195 = vector.broadcast %177 : vector<1x32xf32> to vector<8x32xf32>
    %196 = arith.mulf %194, %195 : vector<8x32xf32>
    %197 = vector.broadcast %178 : vector<1x32xf32> to vector<8x32xf32>
    %198 = arith.addf %196, %197 : vector<8x32xf32>
    %cst_73 = arith.constant dense<0.000000e+00> : vector<8x64xf32>
    %199 = tpu.matmul %198, %6, %cst_73 {dimension_numbers = #tpu.dot_dimension_numbers<[1], [0], [0], [1], [0, 0, 1, 1], [], []>} : vector<8x32xf32>, vector<32x64xf32>, vector<8x64xf32> -> vector<8x64xf32>
    %200 = vector.broadcast %7 : vector<1x64xf32> to vector<8x64xf32>
    %201 = arith.addf %199, %200 : vector<8x64xf32>
    %cst_74 = arith.constant 5.000000e-01 : f32
    %202 = vector.broadcast %cst_74 : f32 to vector<8x64xf32>
    %203 = arith.mulf %202, %201 : vector<8x64xf32>
    %cst_75 = arith.constant 0.707106769 : f32
    %204 = vector.broadcast %cst_75 : f32 to vector<8x64xf32>
    %205 = arith.mulf %201, %204 : vector<8x64xf32>
    %cst_76 = arith.constant 0.000000e+00 : f32
    %206 = vector.broadcast %cst_76 : f32 to vector<8x64xf32>
    %207 = arith.cmpf oge, %205, %206 : vector<8x64xf32>
    %cst_77 = arith.constant 1.000000e+00 : f32
    %cst_78 = arith.constant -1.000000e+00 : f32
    %208 = vector.broadcast %cst_77 : f32 to vector<8x64xf32>
    %209 = vector.broadcast %cst_78 : f32 to vector<8x64xf32>
    %210 = arith.select %207, %208, %209 : vector<8x64xi1>, vector<8x64xf32>
    %211 = math.absf %205 : vector<8x64xf32>
    %cst_79 = arith.constant 0.327591091 : f32
    %212 = vector.broadcast %cst_79 : f32 to vector<8x64xf32>
    %213 = arith.mulf %212, %211 : vector<8x64xf32>
    %cst_80 = arith.constant 1.000000e+00 : f32
    %214 = vector.broadcast %cst_80 : f32 to vector<8x64xf32>
    %215 = arith.addf %214, %213 : vector<8x64xf32>
    %216 = tpu.reciprocal %215 : vector<8x64xf32> -> vector<8x64xf32>
    %cst_81 = arith.constant 1.06140542 : f32
    %217 = vector.broadcast %cst_81 : f32 to vector<8x64xf32>
    %218 = arith.mulf %217, %216 : vector<8x64xf32>
    %cst_82 = arith.constant -1.45315206 : f32
    %219 = vector.broadcast %cst_82 : f32 to vector<8x64xf32>
    %220 = arith.addf %218, %219 : vector<8x64xf32>
    %221 = arith.mulf %220, %216 : vector<8x64xf32>
    %cst_83 = arith.constant 1.42141378 : f32
    %222 = vector.broadcast %cst_83 : f32 to vector<8x64xf32>
    %223 = arith.addf %221, %222 : vector<8x64xf32>
    %224 = arith.mulf %223, %216 : vector<8x64xf32>
    %cst_84 = arith.constant -0.284496725 : f32
    %225 = vector.broadcast %cst_84 : f32 to vector<8x64xf32>
    %226 = arith.addf %224, %225 : vector<8x64xf32>
    %227 = arith.mulf %226, %216 : vector<8x64xf32>
    %cst_85 = arith.constant 0.254829586 : f32
    %228 = vector.broadcast %cst_85 : f32 to vector<8x64xf32>
    %229 = arith.addf %227, %228 : vector<8x64xf32>
    %230 = arith.mulf %229, %216 : vector<8x64xf32>
    %cst_86 = arith.constant 0.000000e+00 : f32
    %231 = vector.broadcast %cst_86 : f32 to vector<8x64xf32>
    %232 = arith.subf %231, %211 : vector<8x64xf32>
    %233 = arith.mulf %232, %211 : vector<8x64xf32>
    %234 = math.exp %233 : vector<8x64xf32>
    %235 = arith.mulf %230, %234 : vector<8x64xf32>
    %cst_87 = arith.constant 1.000000e+00 : f32
    %236 = vector.broadcast %cst_87 : f32 to vector<8x64xf32>
    %237 = arith.subf %236, %235 : vector<8x64xf32>
    %238 = arith.mulf %210, %237 : vector<8x64xf32>
    %cst_88 = arith.constant 1.000000e+00 : f32
    %239 = vector.broadcast %cst_88 : f32 to vector<8x64xf32>
    %240 = arith.addf %239, %238 : vector<8x64xf32>
    %241 = arith.mulf %203, %240 : vector<8x64xf32>
    %cst_89 = arith.constant dense<0.000000e+00> : vector<8x32xf32>
    %242 = tpu.matmul %241, %8, %cst_89 {dimension_numbers = #tpu.dot_dimension_numbers<[1], [0], [0], [1], [0, 0, 1, 1], [], []>} : vector<8x64xf32>, vector<64x32xf32>, vector<8x32xf32> -> vector<8x32xf32>
    %243 = vector.broadcast %9 : vector<1x32xf32> to vector<8x32xf32>
    %244 = arith.addf %242, %243 : vector<8x32xf32>
    %245 = arith.addf %176, %244 : vector<8x32xf32>
    %246 = vector.shape_cast %127 : vector<8x32xf32> to vector<8x1x32xf32>
    %247 = vector.shape_cast %245 : vector<8x32xf32> to vector<8x1x32xf32>
    %248 = tpu.concatenate %246, %247 in 1 : vector<8x1x32xf32>, vector<8x1x32xf32> -> vector<8x2x32xf32>
    %c0_90 = arith.constant 0 : index
    %c0_91 = arith.constant 0 : index
    %c0_92 = arith.constant 0 : index
    %249 = vector.load %arg11[%c0_90, %c0_91, %c0_92] : memref<8x2x32xf32, #tpu.memory_space<vmem>>, vector<8x2x32xf32>
    tpu.vector_store %arg11[%c0_90, %c0_91, %c0_92], %248 {strides = array<i32>} : memref<8x2x32xf32, #tpu.memory_space<vmem>>, vector<8x2x32xf32>,
    return
  }
  func.func @transform_0(%arg0: i32) -> (i32, i32, i32) {
    %c0_i32 = arith.constant 0 : i32
    %c0_i32_0 = arith.constant 0 : i32
    %c0_i32_1 = arith.constant 0 : i32
    %c0_i32_2 = arith.constant 0 : i32
    return %c0_i32, %c0_i32_0, %c0_i32_1 : i32, i32, i32
  }
  func.func @transform_1(%arg0: i32) -> (i32, i32) {
    %c0_i32 = arith.constant 0 : i32
    %c0_i32_0 = arith.constant 0 : i32
    %c0_i32_1 = arith.constant 0 : i32
    return %c0_i32, %c0_i32_0 : i32, i32
  }
  func.func @transform_2(%arg0: i32) -> (i32, i32, i32) {
    %c0_i32 = arith.constant 0 : i32
    %c0_i32_0 = arith.constant 0 : i32
    %c0_i32_1 = arith.constant 0 : i32
    %c0_i32_2 = arith.constant 0 : i32
    return %c0_i32, %c0_i32_0, %c0_i32_1 : i32, i32, i32
  }
  func.func @transform_3(%arg0: i32) -> (i32, i32, i32) {
    %c0_i32 = arith.constant 0 : i32
    %c0_i32_0 = arith.constant 0 : i32
    %c0_i32_1 = arith.constant 0 : i32
    %c0_i32_2 = arith.constant 0 : i32
    return %c0_i32, %c0_i32_0, %c0_i32_1 : i32, i32, i32
  }
  func.func @transform_4(%arg0: i32) -> (i32, i32, i32) {
    %c0_i32 = arith.constant 0 : i32
    %c0_i32_0 = arith.constant 0 : i32
    %c0_i32_1 = arith.constant 0 : i32
    %c0_i32_2 = arith.constant 0 : i32
    return %c0_i32, %c0_i32_0, %c0_i32_1 : i32, i32, i32
  }
  func.func @transform_5(%arg0: i32) -> (i32, i32) {
    %c0_i32 = arith.constant 0 : i32
    %c0_i32_0 = arith.constant 0 : i32
    %c0_i32_1 = arith.constant 0 : i32
    return %c0_i32, %c0_i32_0 : i32, i32
  }
  func.func @transform_6(%arg0: i32) -> (i32, i32) {
    %c0_i32 = arith.constant 0 : i32
    %c0_i32_0 = arith.constant 0 : i32
    %c0_i32_1 = arith.constant 0 : i32
    return %c0_i32, %c0_i32_0 : i32, i32
  }
  func.func @transform_7(%arg0: i32) -> (i32, i32) {
    %c0_i32 = arith.constant 0 : i32
    %c0_i32_0 = arith.constant 0 : i32
    %c0_i32_1 = arith.constant 0 : i32
    return %c0_i32, %c0_i32_0 : i32, i32
  }
  func.func @transform_8(%arg0: i32) -> (i32, i32) {
    %c0_i32 = arith.constant 0 : i32
    %c0_i32_0 = arith.constant 0 : i32
    %c0_i32_1 = arith.constant 0 : i32
    return %c0_i32, %c0_i32_0 : i32, i32
  }
  func.func @transform_9(%arg0: i32) -> (i32, i32) {
    %c0_i32 = arith.constant 0 : i32
    %c0_i32_0 = arith.constant 0 : i32
    %c0_i32_1 = arith.constant 0 : i32
    return %c0_i32, %c0_i32_0 : i32, i32
  }
  func.func @transform_10(%arg0: i32) -> (i32, i32, i32) {
    %c0_i32 = arith.constant 0 : i32
    %c0_i32_0 = arith.constant 0 : i32
    %c0_i32_1 = arith.constant 0 : i32
    %c0_i32_2 = arith.constant 0 : i32
    return %c0_i32, %c0_i32_0, %c0_i32_1 : i32, i32, i32
  }
}

</mosaic_0001>

<bundles_post_ra>
// kernel: transformer_encoder_layer.1
= control target key start
LH: loop header
LB: loop body
LE: loop exit
PB: predicated region body
PF: predicated region fallthrough
CT: control target
= control target key end

     0   :  { %vm93_vm0 = vcmask 1041409   ;;  %vm96_vm1 = vcmask 1042434   ;;  %vm99_vm2 = vcmask 1043459   ;;  %s5364_s0 = inlined_call_operand.vmem [shape: f32[8,2,32], index: 0, kind: input, shape index: {}]   ;;  %s5365_s1 = inlined_call_operand.vmem [shape: f32[4,32], index: 1, kind: input, shape index: {}]   ;;  %s5366_s2 = inlined_call_operand.vmem [shape: f32[4,32,24], index: 2, kind: input, shape index: {}]   ;;  %s5367_s3 = inlined_call_operand.vmem [shape: f32[4,1,24], index: 3, kind: input, shape index: {}]   ;;  %s5368_s4 = inlined_call_operand.vmem [shape: f32[4,8,32], index: 4, kind: input, shape index: {}]   ;;  %s5369_s5 = inlined_call_operand.vmem [shape: f32[1,32], index: 5, kind: input, shape index: {}]   ;;  %s5370_s6 = inlined_call_operand.vmem [shape: f32[32,64], index: 6, kind: input, shape index: {}]   ;;  %s5371_s7 = inlined_call_operand.vmem [shape: f32[1,64], index: 7, kind: input, shape index: {}]   ;;  %s5372_s8 = inlined_call_operand.vmem [shape: f32[64,32], index: 8, kind: input, shape index: {}]   ;;  %s5373_s9 = inlined_call_operand.vmem [shape: f32[1,32], index: 9, kind: input, shape index: {}]   ;;  %s5374_s10 = inlined_call_operand.hbm [shape: f32[8,2,32], index: 10, kind: output, shape index: {}]  }
   0x1   :  { %v4319_v0 = vld [vmem:[%s5364_s0] sm:$0x3]  ;;  %v4324_v1 = vld [vmem:[%s5364_s0 + $0x2] sm:$0x3]  ;;  %v4329_v2 = vld [vmem:[%s5364_s0 + $0x4] sm:$0x3] }
   0x2   :  { %v4334_v3 = vld [vmem:[%s5364_s0 + $0x6] sm:$0x3]  ;;  %v4339_v4 = vld [vmem:[%s5364_s0 + $0x8] sm:$0x3]  ;;  %v4344_v5 = vld [vmem:[%s5364_s0 + $0xa] sm:$0x3] }
   0x3   :  { %v4349_v6 = vld [vmem:[%s5364_s0 + $0xc] sm:$0x3]  ;;  %v4354_v7 = vld [vmem:[%s5364_s0 + $0xe] sm:$0x3]  ;;  %v92_v8 = vrot.slane %v4324_v1, 7  ;;  %v95_v9 = vrot.slane %v4329_v2, 6 }
   0x4   :  { %v98_v10 = vrot.slane %v4334_v3, 5 }
   0x5   :  { %15 = vsyncpa [#allocation3], 0  ;;  %v94_v11 = vsel %vm93_vm0, %v92_v8, %v4319_v0  ;;  %v101_v12 = vrot.slane %v4339_v4, 4  ;;  %vm102_vm3 = vcmask 1044484   ;;  %v104_v13 = vrot.slane %v4344_v5, 3  ;;  %v4437_v63 = vld [vmem:[%s5366_s2 + $0x18] sm:$0xff] }
   0x6   :  { %v97_v14 = vsel %vm96_vm1, %v95_v9, %v94_v11  ;;  %vm105_vm4 = vcmask 1045509   ;;  %v107_v15 = vrot.slane %v4349_v6, 2  ;;  %vm108_vm5 = vcmask 1046534   ;;  %v52_v11 = vld [vmem:[%s5366_s2 + $0x38] sm:$0xff]  ;;  %s4255_s26 = smov 120   ;;  %s4256_s30 = smov 112  }
   0x7   :  { %v100_v16 = vsel %vm99_vm2, %v98_v10, %v97_v14  ;;  %v110_v17 = vrot.slane %v4354_v7, 1  ;;  %vm111_vm6 = vcmask 1047559   ;;  %vm114_vm7 = vcmask 261120  }
   0x8   :  { %v103_v18 = vsel %vm102_vm3, %v101_v12, %v100_v16  ;;  %v4253_v14 = vmov 0.0   ;;  %v4447_v16 = vld [vmem:[%s5366_s2 + $0x10] sm:$0xff]  ;;  %vm4254_vm8 = vmmov 0   ;;  %vm560_vm9 = vcmask 64512  }
   0x9   :  { %v106_v19 = vsel %vm105_vm4, %v104_v13, %v103_v18  ;;  %3879 = vmatprep.subr.mxu0 %v4253_v14  ;;  %3890 = vmatprep.subr.mxu1 %v4253_v14  ;;  %v51_v18 = vld [vmem:[%s5366_s2 + $0x30] sm:$0xff]  ;;  %vm1922_vm10 = vcmask 253952   ;;  %vm1918_vm11 = vcmask 261121   ;;  %vm1812_vm13 = vcmask 523264  }
   0xa   :  { %v109_v20 = vsel %vm108_vm5, %v107_v15, %v106_v19  ;;  %3880 = vmatpush3.msra.mxu0 %v4437_v63  ;;  %3891 = vmatpush3.msra.mxu1 %v52_v11  ;;  %v4458_v19 = vld [vmem:[%s5366_s2 + $0x8] sm:$0xff]  ;;  %vm3678_vm15 = vcmask 1040384  }
   0xb   :  { %v112_v21 = vsel %vm111_vm6, %v110_v17, %v109_v20  ;;  %3881 = vmatprep.subr.mxu0 %v4253_v14  ;;  %3892 = vmatprep.subr.mxu1 %v4253_v14  ;;  %v50_v20 = vld [vmem:[%s5366_s2 + $0x28] sm:$0xff] }
   0xc   :  { %v115_v22 = vsel %vm114_vm7, %v112_v21, 0.0  ;;  %3882 = vmatpush3.msra.mxu0 %v4447_v16  ;;  %3893 = vmatpush3.msra.mxu1 %v51_v18  ;;  %v4469_v21 = vld [vmem:[%s5366_s2] sm:$0xff] }
   0xd   :  { %116 = vadd.xlane.f32.xlu0 %v115_v22  ;;  %3883 = vmatprep.subr.mxu0 %v4253_v14  ;;  %v49_v22 = vld [vmem:[%s5366_s2 + $0x20] sm:$0xff] }
   0xe   :  { %3894 = vmatprep.subr.mxu1 %v4253_v14  ;;  %3884 = vmatpush3.msra.mxu0 %v4458_v19 }
   0xf   :  { %3895 = vmatpush3.msra.mxu1 %v50_v20  ;;  %3885 = vmatprep.subr.mxu0 %v4253_v14 }
  0x10   :  { %3896 = vmatprep.subr.mxu1 %v4253_v14  ;;  %3886 = vmatpush3.msra.mxu0 %v4469_v21 }
  0x11   :  { %3897 = vmatpush3.msra.mxu1 %v49_v22  ;;  %3887 = vmatprep.mubr.msk.f32.mxu0 %vm4254_vm8, %v4253_v14 }
  0x12   :  { %3898 = vmatprep.mubr.msk.f32.mxu1 %vm4254_vm8, %v4253_v14  ;;  %3901 = vmatprep.subr.mxu0 %v4253_v14 }
  0x13   :  { %3912 = vmatprep.subr.mxu1 %v4253_v14 }
  0x96   :  { %v117_v23 = vpop.xlane.xlu0 %116 }
  0x97   :  { %v119_v24 = vmul.f32 0.03125, %v117_v23 }
  0x99   :  { %v121_v25 = vrot.slane %v119_v24, 1  ;;  %v122_v26 = vrot.slane %v119_v24, 2  ;;  %v123_v27 = vrot.slane %v119_v24, 3  ;;  %v124_v28 = vrot.slane %v119_v24, 4 }
  0x9a   :  { %v125_v29 = vrot.slane %v119_v24, 5  ;;  %v126_v30 = vrot.slane %v119_v24, 6  ;;  %v127_v31 = vrot.slane %v119_v24, 7  ;;  %v4387_v32 = vsub.f32 %v4319_v0, %v119_v24 }
  0x9b   :  { %v4390_v33 = vsub.f32 %v4324_v1, %v121_v25  ;;  %v4393_v34 = vsub.f32 %v4329_v2, %v122_v26  ;;  %v4396_v35 = vsub.f32 %v4334_v3, %v123_v27  ;;  %v4399_v36 = vsub.f32 %v4339_v4, %v124_v28 }
  0x9c   :  { %v4402_v37 = vsub.f32 %v4344_v5, %v125_v29  ;;  %v4405_v38 = vsub.f32 %v4349_v6, %v126_v30  ;;  %v4408_v39 = vsub.f32 %v4354_v7, %v127_v31  ;;  %v144_v44 = vmul.f32 %v4387_v32, %v4387_v32  ;;  %v4491_v30 = vld [vmem:[%s5365_s1] sm:$0xf] }
  0x9d   :  { %v145_v40 = vmul.f32 %v4390_v33, %v4390_v33  ;;  %v146_v41 = vmul.f32 %v4393_v34, %v4393_v34  ;;  %v147_v42 = vmul.f32 %v4396_v35, %v4396_v35  ;;  %v148_v43 = vmul.f32 %v4399_v36, %v4399_v36 }
  0x9e   :  { %v149_v45 = vmul.f32 %v4402_v37, %v4402_v37  ;;  %v150_v48 = vmul.f32 %v4405_v38, %v4405_v38  ;;  %v151_v49 = vmul.f32 %v4408_v39, %v4408_v39  ;;  %v205_v26 = vlaneseq }
  0x9f   :  { %v160_v46 = vrot.slane %v145_v40, 7  ;;  %v162_v47 = vrot.slane %v146_v41, 6  ;;  %v164_v51 = vrot.slane %v147_v42, 5  ;;  %v166_v53 = vrot.slane %v148_v43, 4 }
  0xa0   :  { %v168_v55 = vrot.slane %v149_v45, 3  ;;  %v170_v57 = vrot.slane %v150_v48, 2  ;;  %v172_v59 = vrot.slane %v151_v49, 1  ;;  %v4484_v27 = vshrl.u32 %v205_v26, 7 }
  0xa1   :  { %v161_v50 = vsel %vm93_vm0, %v160_v46, %v144_v44 }
  0xa2   :  { %v163_v52 = vsel %vm96_vm1, %v162_v47, %v161_v50  ;;  %v207_v28 = vsub.s32 0, %v4484_v27  ;;  %v219_v29 = vsub.s32 1, %v4484_v27 }
  0xa3   :  { %v165_v54 = vsel %vm99_vm2, %v164_v51, %v163_v52 }
  0xa4   :  { %v167_v56 = vsel %vm102_vm3, %v166_v53, %v165_v54  ;;  %v4494_v40 = vrot.slane %v4491_v30, %v207_v28  ;;  %v4497_v41 = vrot.slane %v4491_v30, %v219_v29 }
  0xa5   :  { %v169_v58 = vsel %vm105_vm4, %v168_v55, %v167_v56 }
  0xa6   :  { %v171_v60 = vsel %vm108_vm5, %v170_v57, %v169_v58 }
  0xa7   :  { %v173_v61 = vsel %vm111_vm6, %v172_v59, %v171_v60 }
  0xa8   :  { %v175_v62 = vsel %vm114_vm7, %v173_v61, 0.0 }
  0xa9   :  { %176 = vadd.xlane.f32.xlu0 %v175_v62 }
 0x132   :  { %v177_v23 = vpop.xlane.xlu0 %176 }
 0x133   :  { %v178_v24 = vmul.f32 0.03125, %v177_v23 }
 0x135   :  { %v179_v25 = vadd.f32 1e-05, %v178_v24 }
 0x137   :  { %4155 = vrsqrt.f32 %v179_v25 }
 0x144   :  { %v4156_v31 = vpop.eup %4155 }
 0x145   :  { %v182_v42 = vrot.slane %v4156_v31, 1  ;;  %v183_v43 = vrot.slane %v4156_v31, 2  ;;  %v184_v44 = vrot.slane %v4156_v31, 3  ;;  %v185_v45 = vrot.slane %v4156_v31, 4 }
 0x146   :  { %v186_v46 = vrot.slane %v4156_v31, 5  ;;  %v187_v47 = vrot.slane %v4156_v31, 6  ;;  %v188_v48 = vrot.slane %v4156_v31, 7  ;;  %v197_v49 = vmul.f32 %v4156_v31, %v4387_v32 }
 0x147   :  { %v198_v50 = vmul.f32 %v182_v42, %v4390_v33  ;;  %v199_v51 = vmul.f32 %v183_v43, %v4393_v34  ;;  %v200_v52 = vmul.f32 %v184_v44, %v4396_v35  ;;  %v201_v53 = vmul.f32 %v185_v45, %v4399_v36 }
 0x148   :  { %v202_v54 = vmul.f32 %v186_v46, %v4402_v37  ;;  %v203_v55 = vmul.f32 %v187_v47, %v4405_v38  ;;  %v204_v56 = vmul.f32 %v188_v48, %v4408_v39  ;;  %v209_v57 = vmul.f32 %v4494_v40, %v197_v49  ;;  %v56_v46 = vld [vmem:[%s5366_s2 + $0x58] sm:$0xff]  ;;  %v55_v49 = vld [vmem:[%s5366_s2 + $0x50] sm:$0xff] }
 0x149   :  { %v210_v58 = vmul.f32 %v4494_v40, %v198_v50  ;;  %v211_v32 = vmul.f32 %v4494_v40, %v199_v51  ;;  %v212_v33 = vmul.f32 %v4494_v40, %v200_v52  ;;  %v213_v34 = vmul.f32 %v4494_v40, %v201_v53  ;;  %v4535_v47 = vld [vmem:[%s5366_s2 + $0x78] sm:$0xff]  ;;  %v4546_v50 = vld [vmem:[%s5366_s2 + $0x70] sm:$0xff]  ;;  %v54_v51 = vld [vmem:[%s5366_s2 + $0x48] sm:$0xff] }
 0x14a   :  { %v214_v35 = vmul.f32 %v4494_v40, %v202_v54  ;;  %v215_v36 = vmul.f32 %v4494_v40, %v203_v55  ;;  %v216_v37 = vmul.f32 %v4494_v40, %v204_v56  ;;  %v221_v61 = vadd.f32 %v4497_v41, %v209_v57  ;;  %v4557_v52 = vld [vmem:[%s5366_s2 + $0x68] sm:$0xff]  ;;  %v53_v53 = vld [vmem:[%s5366_s2 + $0x40] sm:$0xff] }
 0x14b   :  { %v222_v38 = vadd.f32 %v4497_v41, %v210_v58  ;;  %v223_v39 = vadd.f32 %v4497_v41, %v211_v32  ;;  %v224_v59 = vadd.f32 %v4497_v41, %v212_v33  ;;  %v225_v60 = vadd.f32 %v4497_v41, %v213_v34  ;;  %v4569_v54 = vld [vmem:[%s5366_s2 + $0x60] sm:$0xff] }
 0x14c   :  { %v226_v62 = vadd.f32 %v4497_v41, %v214_v35  ;;  %v227_v20 = vadd.f32 %v4497_v41, %v215_v36  ;;  %v228_v22 = vadd.f32 %v4497_v41, %v216_v37  ;;  %v3712_v55 = vld [vmem:[%s5367_s3] ss:$0 sm:$0xff]  ;;  %v3713_v32 = vld [vmem:[%s5367_s3 + $0x1] ss:$0 sm:$0xff]  ;;  %v3715_v36 = vld [vmem:[%s5367_s3 + $0x3] ss:$0 sm:$0xff] }
 0x14d   :  { %v261_v11 = vrot.slane %v222_v38, 7  ;;  %v263_v18 = vrot.slane %v223_v39, 6  ;;  %v265_v24 = vrot.slane %v224_v59, 5  ;;  %v267_v26 = vrot.slane %v225_v60, 4  ;;  %v3714_v37 = vld [vmem:[%s5367_s3 + $0x2] ss:$0 sm:$0xff] }
 0x14e   :  { %v269_v29 = vrot.slane %v226_v62, 3  ;;  %v271_v42 = vrot.slane %v227_v20, 2  ;;  %v273_v44 = vrot.slane %v228_v22, 1 }
 0x14f   :  { %v262_v23 = vsel %vm93_vm0, %v261_v11, %v221_v61 }
 0x150   :  { %v264_v25 = vsel %vm96_vm1, %v263_v18, %v262_v23 }
 0x151   :  { %v266_v28 = vsel %vm99_vm2, %v265_v24, %v264_v25 }
 0x152   :  { %v268_v31 = vsel %vm102_vm3, %v267_v26, %v266_v28 }
 0x153   :  { %v270_v43 = vsel %vm105_vm4, %v269_v29, %v268_v31 }
 0x154   :  { %v272_v45 = vsel %vm108_vm5, %v271_v42, %v270_v43 }
 0x155   :  { %v274_v48 = vsel %vm111_vm6, %v273_v44, %v272_v45 }
 0x156   :  { %3888 = vmatmul.mubr.msk.f32.vlgmr.msra.gmra.mxu0 %vm114_vm7, %v274_v48  ;;  %3899 = vmatmul.mubr.msk.f32.vlgmr.msra.gmra.mxu1 %vm114_vm7, %v274_v48 }
 0x157   :  { %3902 = vmatpush3.msra.mxu0 %v56_v46  ;;  %3913 = vmatpush3.msra.mxu1 %v4535_v47 }
 0x158   :  { %3903 = vmatprep.subr.mxu0 %v4253_v14  ;;  %3914 = vmatprep.subr.mxu1 %v4253_v14 }
 0x159   :  { %3904 = vmatpush3.msra.mxu0 %v55_v49  ;;  %3915 = vmatpush3.msra.mxu1 %v4546_v50 }
 0x15a   :  { %3905 = vmatprep.subr.mxu0 %v4253_v14  ;;  %3916 = vmatprep.subr.mxu1 %v4253_v14 }
 0x15b   :  { %3906 = vmatpush3.msra.mxu0 %v54_v51  ;;  %3917 = vmatpush3.msra.mxu1 %v4557_v52 }
 0x15c   :  { %3907 = vmatprep.subr.mxu0 %v4253_v14  ;;  %3918 = vmatprep.subr.mxu1 %v4253_v14 }
 0x15d   :  { %3908 = vmatpush3.msra.mxu0 %v53_v53  ;;  %3909 = vmatprep.mubr.msk.f32.mxu0 %vm4254_vm8, %v4253_v14 }
 0x15e   :  { %3919 = vmatpush3.msra.mxu1 %v4569_v54  ;;  %3920 = vmatprep.mubr.msk.f32.mxu1 %vm4254_vm8, %v4253_v14 }
 0x15f   :  { %3910 = vmatmul.mubr.msk.f32.vlgmr.msra.gmra.mxu0 %vm114_vm7, %v274_v48  ;;  %3921 = vmatmul.mubr.msk.f32.vlgmr.msra.gmra.mxu1 %vm114_vm7, %v274_v48 }
 0x160   :  { %3923 = vmatprep.subr.mxu0 %v4253_v14  ;;  %3925 = vmatprep.mubr.msk.f32.mxu0 %vm4254_vm8, %v4253_v14 }
 0x161   :  { %3938 = vmatprep.subr.mxu1 %v4253_v14  ;;  %3940 = vmatprep.mubr.msk.f32.mxu1 %vm4254_vm8, %v4253_v14 }
 0x216   :  { %v343_v56 = vpop.f32.mrf.mxu0  ;;  %v413_v57 = vpop.f32.mrf.mxu1 }
 0x217   :  { %v344_v58 = vadd.f32 %v3712_v55, %v343_v56  ;;  %v414_v35 = vadd.f32 %v3713_v32, %v413_v57 }
 0x218   :  { %v3889_v33 = vpop.f32.mrf.mxu0  ;;  %v3900_v34 = vpop.f32.mrf.mxu1 }
 0x219   :  { %558 = vrot.lane.b32.xlu1 %v344_v58, %s4255_s26 }
 0x21d   :  { %636 = vrot.lane.b32.xlu1 %v414_v35, %s4255_s26 }
 0x21f   :  { %v553_v38 = vpop.f32.mrf.mxu1  ;;  %v483_v39 = vpop.f32.mrf.mxu0 }
 0x220   :  { %v4600_v59 = vadd.f32 %v3715_v36, %v553_v38  ;;  %v4602_v60 = vadd.f32 %v3714_v37, %v483_v39 }
 0x221   :  { %v3911_v61 = vpop.f32.mrf.mxu0  ;;  %v3922_v62 = vpop.f32.mrf.mxu1 }
 0x222   :  { %713 = vrot.lane.b32.xlu0 %v4602_v60, %s4255_s26  ;;  %790 = vrot.lane.b32.xlu1 %v4600_v59, %s4255_s26 }
 0x28b   :  { %v559_v11 = vpop.permute.xlu1 %558 }
 0x28c   :  { %3924 = vmatpush3.xpose.msk.msra.mxu0 %vm560_vm9, %v559_v11 }
 0x28d   :  { %3928 = vmatprep.subr.mxu0 %v4253_v14 }
 0x28f   :  { %3926 = vmatmul.mubr.msk.f32.vlgmr.msra.gmra.mxu0 %vm560_vm9, %v344_v58  ;;  %v637_v18 = vpop.permute.xlu1 %636 }
 0x290   :  { %3929 = vmatpush3.xpose.msk.msra.mxu0 %vm560_vm9, %v637_v18  ;;  %3930 = vmatprep.mubr.msk.f32.mxu0 %vm4254_vm8, %v4253_v14 }
 0x291   :  { %3933 = vmatprep.subr.mxu0 %v4253_v14 }
 0x293   :  { %3931 = vmatmul.mubr.msk.f32.vlgmr.msra.gmra.mxu0 %vm560_vm9, %v414_v35 }
 0x294   :  { %v714_v20 = vpop.permute.xlu0 %713  ;;  %v791_v22 = vpop.permute.xlu1 %790  ;;  %3935 = vmatprep.mubr.msk.f32.mxu0 %vm4254_vm8, %v4253_v14 }
 0x295   :  { %3934 = vmatpush3.xpose.msk.msra.mxu0 %vm560_vm9, %v714_v20  ;;  %3939 = vmatpush3.xpose.msk.msra.mxu1 %vm560_vm9, %v791_v22 }
 0x296   :  { %3943 = vmatprep.subr.mxu0 %v4253_v14  ;;  %3948 = vmatprep.subr.mxu1 %v4253_v14 }
 0x298   :  { %3936 = vmatmul.mubr.msk.f32.vlgmr.msra.gmra.mxu0 %vm560_vm9, %v4602_v60  ;;  %3941 = vmatmul.mubr.msk.f32.vlgmr.msra.gmra.mxu1 %vm560_vm9, %v4600_v59 }
 0x299   :  { %3945 = vmatprep.mubr.msk.f32.mxu0 %vm4254_vm8, %v4253_v14  ;;  %3950 = vmatprep.mubr.msk.f32.mxu1 %vm4254_vm8, %v4253_v14 }
 0x34f   :  { %v631_v23 = vpop.f32.mrf.mxu0 }
 0x350   :  { %v866_v24 = vsel %vm560_vm9, %v631_v23, -inf }
 0x351   :  { %867 = vmax.xlane.f32.xlu1 %v866_v24  ;;  %v3927_v25 = vpop.f32.mrf.mxu0 }
 0x353   :  { %v708_v26 = vpop.f32.mrf.mxu0 }
 0x354   :  { %v869_v28 = vsel %vm560_vm9, %v708_v26, -inf }
 0x355   :  { %870 = vmax.xlane.f32.xlu0 %v869_v28  ;;  %v3932_v29 = vpop.f32.mrf.mxu0 }
 0x358   :  { %v785_v31 = vpop.f32.mrf.mxu0  ;;  %v862_v42 = vpop.f32.mrf.mxu1 }
 0x359   :  { %v872_v43 = vsel %vm560_vm9, %v785_v31, -inf  ;;  %v875_v46 = vsel %vm560_vm9, %v862_v42, -inf }
 0x35a   :  { %v3942_v44 = vpop.f32.mrf.mxu1  ;;  %873 = vmax.xlane.f32.xlu1 %v872_v43  ;;  %v3937_v45 = vpop.f32.mrf.mxu0 }
 0x35e   :  { %876 = vmax.xlane.f32.xlu1 %v875_v46 }
 0x36b   :  { %910 = vrot.lane.b32.xlu0 %v344_v58, %s4256_s30 }
 0x36f   :  { %986 = vrot.lane.b32.xlu1 %v414_v35, %s4256_s30 }
 0x3da   :  { %v868_v48 = vpop.xlane.xlu1 %867 }
 0x3db   :  { %v878_v49 = vsub.f32 %v631_v23, %v868_v48  ;;  %v65_v48 = vld [vmem:[%s5368_s4] sm:$0xff] }
 0x3dd   :  { %v882_v51 = vmul.f32 1.442695, %v878_v49  ;;  %v4667_v49 = vld [vmem:[%s5368_s4 + $0x8] sm:$0xff] }
 0x3de   :  { %v871_v53 = vpop.xlane.xlu0 %870 }
 0x3df   :  { %4157 = vpow2.f32 %v882_v51  ;;  %v879_v55 = vsub.f32 %v708_v26, %v871_v53  ;;  %v67_v51 = vld [vmem:[%s5368_s4 + $0x10] sm:$0xff] }
 0x3e1   :  { %v884_v56 = vmul.f32 1.442695, %v879_v55 }
 0x3e2   :  { %v911_v57 = vpop.permute.xlu0 %910 }
 0x3e3   :  { %4159 = vpow2.f32 %v884_v56  ;;  %v874_v32 = vpop.xlane.xlu1 %873  ;;  %3944 = vmatpush3.msra.mxu0 %v911_v57  ;;  %v68_v56 = vld [vmem:[%s5368_s4 + $0x18] sm:$0xff] }
 0x3e4   :  { %v880_v33 = vsub.f32 %v785_v31, %v874_v32  ;;  %3953 = vmatprep.subr.mxu0 %v4253_v14 }
 0x3e6   :  { %v886_v34 = vmul.f32 1.442695, %v880_v33 }
 0x3e7   :  { %v877_v36 = vpop.xlane.xlu1 %876 }
 0x3e8   :  { %4161 = vpow2.f32 %v886_v34  ;;  %v881_v58 = vsub.f32 %v862_v42, %v877_v36 }
 0x3ea   :  { %v888_v37 = vmul.f32 1.442695, %v881_v58 }
 0x3eb   :  { %v987_v35 = vpop.permute.xlu1 %986 }
 0x3ec   :  { %v4158_v38 = vpop.eup %4157  ;;  %4163 = vpow2.f32 %v888_v37  ;;  %3949 = vmatpush3.msra.mxu1 %v987_v35 }
 0x3ed   :  { %v890_v39 = vsel %vm560_vm9, %v4158_v38, 0.0  ;;  %3958 = vmatprep.subr.mxu1 %v4253_v14 }
 0x3ee   :  { %891 = vadd.xlane.f32.xlu1 %v890_v39 }
 0x3f0   :  { %v4160_v61 = vpop.eup %4159 }
 0x3f1   :  { %v893_v62 = vsel %vm560_vm9, %v4160_v61, 0.0 }
 0x3f2   :  { %894 = vadd.xlane.f32.xlu1 %v893_v62 }
 0x3f5   :  { %v4162_v11 = vpop.eup %4161 }
 0x3f6   :  { %v896_v18 = vsel %vm560_vm9, %v4162_v11, 0.0 }
 0x3f7   :  { %897 = vadd.xlane.f32.xlu0 %v896_v18 }
 0x3f9   :  { %v4164_v20 = vpop.eup %4163 }
 0x3fa   :  { %v899_v22 = vsel %vm560_vm9, %v4164_v20, 0.0 }
 0x3fb   :  { %900 = vadd.xlane.f32.xlu1 %v899_v22 }
 0x40c   :  { %1062 = vrot.lane.b32.xlu1 %v4602_v60, %s4256_s30 }
 0x40d   :  { %1138 = vrot.lane.b32.xlu0 %v4600_v59, %s4256_s30 }
 0x477   :  { %v892_v23 = vpop.xlane.xlu1 %891 }
 0x478   :  { %4165 = vrcp.f32 %v892_v23 }
 0x47b   :  { %v895_v24 = vpop.xlane.xlu1 %894 }
 0x47c   :  { %4167 = vrcp.f32 %v895_v24 }
 0x480   :  { %v898_v25 = vpop.xlane.xlu0 %897 }
 0x481   :  { %4169 = vrcp.f32 %v898_v25  ;;  %v3736_v25 = vld [vmem:[%s5369_s5] ss:$0 sm:$0xff] }
 0x484   :  { %v901_v26 = vpop.xlane.xlu1 %900  ;;  %v1139_v59 = vpop.permute.xlu0 %1138 }
 0x485   :  { %v4166_v28 = vpop.eup %4165  ;;  %4171 = vrcp.f32 %v901_v26 }
 0x486   :  { %v906_v29 = vmul.f32 %v4166_v28, %v4158_v38 }
 0x488   :  { %v1063_v31 = vpop.permute.xlu1 %1062  ;;  %3946 = vmatmul.mubr.msk.f32.vlgmr.msra.gmra.mxu0 %vm560_vm9, %v906_v29 }
 0x489   :  { %v4168_v42 = vpop.eup %4167  ;;  %3954 = vmatpush3.msra.mxu0 %v1063_v31  ;;  %3955 = vmatprep.mubr.msk.f32.mxu0 %vm4254_vm8, %v4253_v14 }
 0x48a   :  { %v907_v60 = vmul.f32 %v4168_v42, %v4160_v61  ;;  %3963 = vmatprep.subr.mxu0 %v4253_v14 }
 0x48c   :  { %3951 = vmatmul.mubr.msk.f32.vlgmr.msra.gmra.mxu1 %vm560_vm9, %v907_v60 }
 0x48d   :  { %3959 = vmatpush3.msra.mxu1 %v1139_v59  ;;  %3960 = vmatprep.mubr.msk.f32.mxu1 %vm4254_vm8, %v4253_v14 }
 0x48e   :  { %v4170_v43 = vpop.eup %4169  ;;  %3968 = vmatprep.subr.mxu1 %v4253_v14 }
 0x48f   :  { %v908_v44 = vmul.f32 %v4170_v43, %v4162_v11 }
 0x491   :  { %3956 = vmatmul.mubr.msk.f32.vlgmr.msra.gmra.mxu0 %vm560_vm9, %v908_v44 }
 0x492   :  { %v4172_v45 = vpop.eup %4171  ;;  %3965 = vmatprep.mubr.msk.f32.mxu0 %vm4254_vm8, %v4253_v14  ;;  %3964 = vmatpush3.msra.mxu0 %v65_v48 }
 0x493   :  { %v909_v46 = vmul.f32 %v4172_v45, %v4164_v20  ;;  %3973 = vmatprep.subr.mxu0 %v4253_v14 }
 0x495   :  { %3961 = vmatmul.mubr.msk.f32.vlgmr.msra.gmra.mxu1 %vm560_vm9, %v909_v46 }
 0x496   :  { %3970 = vmatprep.mubr.msk.f32.mxu1 %vm4254_vm8, %v4253_v14  ;;  %3969 = vmatpush3.msra.mxu1 %v4667_v49 }
 0x497   :  { %3978 = vmatprep.subr.mxu1 %v4253_v14 }
 0x548   :  { %v982_v53 = vpop.f32.mrf.mxu0 }
 0x549   :  { %3966 = vmatmul.mubr.msk.f32.vlgmr.msra.gmra.mxu0 %vm560_vm9, %v982_v53 }
 0x54a   :  { %v3947_v55 = vpop.f32.mrf.mxu0  ;;  %3974 = vmatpush3.msra.mxu0 %v67_v51  ;;  %3975 = vmatprep.mubr.msk.f32.mxu0 %vm4254_vm8, %v4253_v14 }
 0x54b   :  { %3983 = vmatprep.subr.mxu0 %v4253_v14 }
 0x54c   :  { %v1058_v57 = vpop.f32.mrf.mxu1 }
 0x54d   :  { %3971 = vmatmul.mubr.msk.f32.vlgmr.msra.gmra.mxu1 %vm560_vm9, %v1058_v57 }
 0x54e   :  { %v3952_v32 = vpop.f32.mrf.mxu1  ;;  %3979 = vmatpush3.msra.mxu1 %v68_v56  ;;  %3980 = vmatprep.mubr.msk.f32.mxu1 %vm4254_vm8, %v4253_v14 }
 0x54f   :  { %3994 = vmatprep.subr.mxu1 %v4253_v14 }
 0x551   :  { %v1134_v33 = vpop.f32.mrf.mxu0 }
 0x552   :  { %3976 = vmatmul.mubr.msk.f32.vlgmr.msra.gmra.mxu0 %vm560_vm9, %v1134_v33 }
 0x553   :  { %v3957_v34 = vpop.f32.mrf.mxu0  ;;  %3991 = vmatprep.mubr.msk.f32.mxu0 %vm4254_vm8, %v4253_v14 }
 0x555   :  { %v1210_v36 = vpop.f32.mrf.mxu1 }
 0x556   :  { %3981 = vmatmul.mubr.msk.f32.vlgmr.msra.gmra.mxu1 %vm560_vm9, %v1210_v36 }
 0x557   :  { %v3962_v58 = vpop.f32.mrf.mxu1  ;;  %4010 = vmatprep.mubr.msk.f32.mxu1 %vm4254_vm8, %v4253_v14 }
 0x609   :  { %v1283_v37 = vpop.f32.mrf.mxu0 }
 0x60a   :  { %v1506_v11 = vsel %vm114_vm7, %v1283_v37, 0.0 }
 0x60b   :  { %v3967_v35 = vpop.f32.mrf.mxu0 }
 0x60d   :  { %v1356_v38 = vpop.f32.mrf.mxu1 }
 0x60e   :  { %v1507_v61 = vsel %vm114_vm7, %v1356_v38, 0.0 }
 0x60f   :  { %v3972_v39 = vpop.f32.mrf.mxu1  ;;  %v1508_v20 = vadd.f32 %v1507_v61, %v1506_v11 }
 0x612   :  { %v1429_v62 = vpop.f32.mrf.mxu0 }
 0x613   :  { %v1509_v18 = vsel %vm114_vm7, %v1429_v62, 0.0 }
 0x614   :  { %v3977_v22 = vpop.f32.mrf.mxu0  ;;  %v1510_v23 = vadd.f32 %v1509_v18, %v1508_v20 }
 0x616   :  { %v1502_v24 = vpop.f32.mrf.mxu1 }
 0x617   :  { %v1511_v26 = vsel %vm114_vm7, %v1502_v24, 0.0 }
 0x618   :  { %v1512_v28 = vadd.f32 %v1511_v26, %v1510_v23  ;;  %v3982_v29 = vpop.f32.mrf.mxu1  ;;  %v1910_v26 = vsel %vm96_vm1, %v92_v8, %v4319_v0 }
 0x61a   :  { %v1519_v31 = vadd.f32 %v3736_v25, %v1512_v28  ;;  %v1923_v25 = vsel %vm1922_vm10, %v110_v17, 0.0 }
 0x61c   :  { %v1521_v42 = vrot.slane %v1519_v31, 1  ;;  %v1522_v60 = vrot.slane %v1519_v31, 2  ;;  %v1523_v59 = vrot.slane %v1519_v31, 3  ;;  %v1524_v43 = vrot.slane %v1519_v31, 4 }
 0x61d   :  { %v1525_v44 = vrot.slane %v1519_v31, 5  ;;  %v1526_v45 = vrot.slane %v1519_v31, 6  ;;  %v1527_v46 = vrot.slane %v1519_v31, 7  ;;  %v4711_v56 = vadd.f32 %v1519_v31, %v4319_v0 }
 0x61e   :  { %v4699_v48 = vadd.f32 %v1521_v42, %v4324_v1  ;;  %v4702_v51 = vadd.f32 %v1522_v60, %v4329_v2  ;;  %v4705_v53 = vadd.f32 %v1523_v59, %v4334_v3  ;;  %v4708_v55 = vadd.f32 %v1524_v43, %v4339_v4 }
 0x61f   :  { %v4714_v57 = vadd.f32 %v1525_v44, %v4344_v5  ;;  %v4719_v34 = vadd.f32 %v1526_v45, %v4349_v6  ;;  %v4722_v36 = vadd.f32 %v1527_v46, %v4354_v7  ;;  %v1911_v31 = vsel %vm99_vm2, %v95_v9, %v1910_v26 }
 0x620   :  { %v1552_v32 = vrot.slane %v4699_v48, 7  ;;  %v1554_v33 = vrot.slane %v4702_v51, 6  ;;  %v1556_v37 = vrot.slane %v4705_v53, 5  ;;  %v1558_v38 = vrot.slane %v4708_v55, 4 }
 0x621   :  { %v1560_v61 = vrot.slane %v4714_v57, 3  ;;  %v1562_v11 = vrot.slane %v4719_v34, 2  ;;  %v1564_v20 = vrot.slane %v4722_v36, 1 }
 0x622   :  { %v1553_v58 = vsel %vm93_vm0, %v1552_v32, %v4711_v56 }
 0x623   :  { %v1555_v35 = vsel %vm96_vm1, %v1554_v33, %v1553_v58 }
 0x624   :  { %v1557_v39 = vsel %vm99_vm2, %v1556_v37, %v1555_v35 }
 0x625   :  { %v1559_v62 = vsel %vm102_vm3, %v1558_v38, %v1557_v39 }
 0x626   :  { %v1561_v18 = vsel %vm105_vm4, %v1560_v61, %v1559_v62 }
 0x627   :  { %v1563_v22 = vsel %vm108_vm5, %v1562_v11, %v1561_v18  ;;  %v1912_v18 = vsel %vm102_vm3, %v98_v10, %v1911_v31 }
 0x628   :  { %v1565_v23 = vsel %vm111_vm6, %v1564_v20, %v1563_v22  ;;  %v1913_v10 = vsel %vm105_vm4, %v101_v12, %v1912_v18 }
 0x629   :  { %v1567_v24 = vsel %vm114_vm7, %v1565_v23, 0.0 }
 0x62a   :  { %1568 = vadd.xlane.f32.xlu1 %v1567_v24 }
 0x62e   :  { %1924 = vadd.xlane.f32.xlu1 %v1923_v25 }
 0x6b3   :  { %v1569_v28 = vpop.xlane.xlu1 %1568 }
 0x6b4   :  { %v1570_v29 = vmul.f32 0.03125, %v1569_v28 }
 0x6b6   :  { %v1572_v42 = vrot.slane %v1570_v29, 1  ;;  %v1573_v60 = vrot.slane %v1570_v29, 2  ;;  %v1574_v59 = vrot.slane %v1570_v29, 3  ;;  %v1575_v43 = vrot.slane %v1570_v29, 4 }
 0x6b7   :  { %v1576_v44 = vrot.slane %v1570_v29, 5  ;;  %v1577_v45 = vrot.slane %v1570_v29, 6  ;;  %v1578_v46 = vrot.slane %v1570_v29, 7  ;;  %v4749_v17 = vsub.f32 %v4711_v56, %v1570_v29  ;;  %v1925_v58 = vpop.xlane.xlu1 %1924 }
 0x6b8   :  { %v4752_v32 = vsub.f32 %v4699_v48, %v1572_v42  ;;  %v4755_v8 = vsub.f32 %v4702_v51, %v1573_v60  ;;  %v4758_v33 = vsub.f32 %v4705_v53, %v1574_v59  ;;  %v4761_v9 = vsub.f32 %v4708_v55, %v1575_v43 }
 0x6b9   :  { %v4764_v37 = vsub.f32 %v4714_v57, %v1576_v44  ;;  %v4767_v35 = vsub.f32 %v4719_v34, %v1577_v45  ;;  %v4770_v38 = vsub.f32 %v4722_v36, %v1578_v46  ;;  %v1927_v20 = vmul.f32 0.03125, %v1925_v58 }
 0x6ba   :  { %v1596_v39 = vmul.f32 %v4752_v32, %v4752_v32  ;;  %v1597_v61 = vmul.f32 %v4755_v8, %v4755_v8  ;;  %v1598_v62 = vmul.f32 %v4758_v33, %v4758_v33  ;;  %v1599_v11 = vmul.f32 %v4761_v9, %v4761_v9 }
 0x6bb   :  { %v1595_v22 = vmul.f32 %v4749_v17, %v4749_v17  ;;  %v1600_v23 = vmul.f32 %v4764_v37, %v4764_v37  ;;  %v1601_v26 = vmul.f32 %v4767_v35, %v4767_v35  ;;  %v1936_v28 = vrot.slane %v1927_v20, 7 }
 0x6bc   :  { %v1611_v24 = vrot.slane %v1596_v39, 7  ;;  %v1613_v25 = vrot.slane %v1597_v61, 6  ;;  %v1602_v29 = vmul.f32 %v4770_v38, %v4770_v38  ;;  %v1615_v60 = vrot.slane %v1598_v62, 5 }
 0x6bd   :  { %v1617_v59 = vrot.slane %v1599_v11, 4  ;;  %v4797_v43 = vsub.f32 %v4354_v7, %v1936_v28  ;;  %v1619_v45 = vrot.slane %v1600_v23, 3  ;;  %v1621_v58 = vrot.slane %v1601_v26, 2  ;;  %v4837_v26 = vld [vmem:[%s5370_s6] sm:$0xff] }
 0x6be   :  { %v1612_v42 = vsel %vm93_vm0, %v1611_v24, %v1595_v22  ;;  %v1914_v39 = vsel %vm108_vm5, %v104_v13, %v1913_v10  ;;  %v1623_v62 = vrot.slane %v1602_v29, 1  ;;  %v4818_v24 = vld [vmem:[%s5370_s6 + $0x18] sm:$0xff] }
 0x6bf   :  { %v1614_v31 = vsel %vm96_vm1, %v1613_v25, %v1612_v42  ;;  %v1960_v61 = vmul.f32 %v4797_v43, %v4797_v43  ;;  %v1915_v20 = vsel %vm111_vm6, %v107_v15, %v1914_v39  ;;  %v4823_v25 = vld [vmem:[%s5370_s6 + $0x10] sm:$0xff]  ;;  %3984 = vmatpush3.msra.mxu0 %v4818_v24  ;;  %v4830_v15 = vld [vmem:[%s5370_s6 + $0x8] sm:$0xff] }
 0x6c0   :  { %v1616_v44 = vsel %vm99_vm2, %v1615_v60, %v1614_v31  ;;  %v1919_v23 = vsel %vm1918_vm11, %v1915_v20, 0.0  ;;  %3985 = vmatprep.subr.mxu0 %v4253_v14 }
 0x6c1   :  { %v1618_v46 = vsel %vm102_vm3, %v1617_v59, %v1616_v44  ;;  %v1981_v7 = vrot.slane %v1960_v61, 1  ;;  %3986 = vmatpush3.msra.mxu0 %v4823_v25 }
 0x6c2   :  { %v1620_v12 = vsel %vm105_vm4, %v1619_v45, %v1618_v46  ;;  %3987 = vmatprep.subr.mxu0 %v4253_v14 }
 0x6c3   :  { %v1622_v11 = vsel %vm108_vm5, %v1621_v58, %v1620_v12  ;;  %v1987_v13 = vsel %vm1922_vm10, %v1981_v7, 0.0  ;;  %3988 = vmatpush3.msra.mxu0 %v4830_v15 }
 0x6c4   :  { %v1624_v18 = vsel %vm111_vm6, %v1623_v62, %v1622_v11  ;;  %1988 = vadd.xlane.f32.xlu1 %v1987_v13  ;;  %3989 = vmatprep.subr.mxu0 %v4253_v14 }
 0x6c5   :  { %v1626_v22 = vsel %vm114_vm7, %v1624_v18, 0.0  ;;  %3990 = vmatpush3.msra.mxu0 %v4837_v26 }
 0x6c6   :  { %1627 = vadd.xlane.f32.xlu0 %v1626_v22  ;;  %4013 = vmatprep.subr.mxu0 %v4253_v14 }
 0x6ca   :  { %1920 = vadd.xlane.f32.xlu0 %v1919_v23 }
 0x74f   :  { %v1628_v28 = vpop.xlane.xlu0 %1627 }
 0x750   :  { %v1629_v29 = vmul.f32 0.03125, %v1628_v28  ;;  %v1658_v28 = vsub.s32 2, %v4484_v27 }
 0x752   :  { %v1630_v42 = vadd.f32 1e-05, %v1629_v29  ;;  %v1670_v29 = vsub.s32 3, %v4484_v27 }
 0x753   :  { %v1921_v60 = vpop.xlane.xlu0 %1920 }
 0x754   :  { %4173 = vrsqrt.f32 %v1630_v42  ;;  %v1926_v10 = vmul.f32 0.03125, %v1921_v60 }
 0x756   :  { %v1930_v31 = vrot.slane %v1926_v10, 1  ;;  %v1931_v59 = vrot.slane %v1926_v10, 2  ;;  %v1932_v44 = vrot.slane %v1926_v10, 3  ;;  %v1933_v45 = vrot.slane %v1926_v10, 4 }
 0x757   :  { %v1934_v46 = vrot.slane %v1926_v10, 5  ;;  %v1935_v58 = vrot.slane %v1926_v10, 6  ;;  %v4844_v39 = vsub.f32 %v4319_v0, %v1926_v10 }
 0x758   :  { %v4847_v61 = vsub.f32 %v4324_v1, %v1930_v31  ;;  %v4850_v12 = vsub.f32 %v4329_v2, %v1931_v59  ;;  %v4853_v62 = vsub.f32 %v4334_v3, %v1932_v44  ;;  %v4856_v11 = vsub.f32 %v4339_v4, %v1933_v45 }
 0x759   :  { %v4859_v7 = vsub.f32 %v4344_v5, %v1934_v46  ;;  %v4862_v18 = vsub.f32 %v4349_v6, %v1935_v58  ;;  %v1953_v0 = vmul.f32 %v4844_v39, %v4844_v39  ;;  %v4885_v46 = vrot.slane %v4491_v30, %v1658_v28 }
 0x75a   :  { %v1954_v1 = vmul.f32 %v4847_v61, %v4847_v61  ;;  %v1955_v2 = vmul.f32 %v4850_v12, %v4850_v12  ;;  %v1956_v3 = vmul.f32 %v4853_v62, %v4853_v62  ;;  %v1957_v4 = vmul.f32 %v4856_v11, %v4856_v11 }
 0x75b   :  { %v1958_v5 = vmul.f32 %v4859_v7, %v4859_v7  ;;  %v1959_v6 = vmul.f32 %v4862_v18, %v4862_v18  ;;  %v4888_v58 = vrot.slane %v4491_v30, %v1670_v29 }
 0x75c   :  { %v1969_v20 = vrot.slane %v1954_v1, 7  ;;  %v1971_v22 = vrot.slane %v1955_v2, 6  ;;  %v1973_v13 = vrot.slane %v1956_v3, 5  ;;  %v1975_v23 = vrot.slane %v1957_v4, 4 }
 0x75d   :  { %v1977_v60 = vrot.slane %v1958_v5, 3  ;;  %v1979_v31 = vrot.slane %v1959_v6, 2 }
 0x75e   :  { %v1970_v42 = vsel %vm96_vm1, %v1969_v20, %v1953_v0 }
 0x75f   :  { %v1972_v10 = vsel %vm99_vm2, %v1971_v22, %v1970_v42 }
 0x760   :  { %v1974_v59 = vsel %vm102_vm3, %v1973_v13, %v1972_v10 }
 0x761   :  { %v4174_v44 = vpop.eup %4173  ;;  %v1976_v45 = vsel %vm105_vm4, %v1975_v23, %v1974_v59 }
 0x762   :  { %v1978_v1 = vsel %vm108_vm5, %v1977_v60, %v1976_v45  ;;  %v1633_v27 = vrot.slane %v4174_v44, 1  ;;  %v1634_v2 = vrot.slane %v4174_v44, 2  ;;  %v1635_v0 = vrot.slane %v4174_v44, 3 }
 0x763   :  { %v1980_v3 = vsel %vm111_vm6, %v1979_v31, %v1978_v1  ;;  %v1636_v4 = vrot.slane %v4174_v44, 4  ;;  %v1637_v5 = vrot.slane %v4174_v44, 5  ;;  %v1638_v6 = vrot.slane %v4174_v44, 6 }
 0x764   :  { %v1984_v20 = vsel %vm1918_vm11, %v1980_v3, 0.0  ;;  %v1639_v22 = vrot.slane %v4174_v44, 7  ;;  %v1648_v13 = vmul.f32 %v4174_v44, %v4749_v17  ;;  %v1649_v23 = vmul.f32 %v1633_v27, %v4752_v32 }
 0x765   :  { %1985 = vadd.xlane.f32.xlu0 %v1984_v20  ;;  %v1650_v30 = vmul.f32 %v1634_v2, %v4755_v8  ;;  %v1651_v28 = vmul.f32 %v1635_v0, %v4758_v33  ;;  %v1652_v29 = vmul.f32 %v1636_v4, %v4761_v9  ;;  %v1653_v42 = vmul.f32 %v1637_v5, %v4764_v37 }
 0x766   :  { %v1654_v60 = vmul.f32 %v1638_v6, %v4767_v35  ;;  %v1655_v10 = vmul.f32 %v1639_v22, %v4770_v38  ;;  %v1660_v31 = vmul.f32 %v4885_v46, %v1648_v13  ;;  %v1661_v59 = vmul.f32 %v4885_v46, %v1649_v23 }
 0x767   :  { %v1662_v17 = vmul.f32 %v4885_v46, %v1650_v30  ;;  %v1663_v32 = vmul.f32 %v4885_v46, %v1651_v28  ;;  %v1664_v8 = vmul.f32 %v4885_v46, %v1652_v29  ;;  %v1665_v33 = vmul.f32 %v4885_v46, %v1653_v42 }
 0x768   :  { %v1666_v9 = vmul.f32 %v4885_v46, %v1654_v60  ;;  %v1667_v37 = vmul.f32 %v4885_v46, %v1655_v10  ;;  %v1673_v35 = vadd.f32 %v4888_v58, %v1661_v59  ;;  %v1672_v1 = vadd.f32 %v4888_v58, %v1660_v31  ;;  %v4966_v31 = vld [vmem:[%s5372_s8 + $0x18] sm:$0xff]  ;;  %v1989_v59 = vpop.xlane.xlu1 %1988 }
 0x769   :  { %v1674_v38 = vadd.f32 %v4888_v58, %v1662_v17  ;;  %v1675_v44 = vadd.f32 %v4888_v58, %v1663_v32  ;;  %v1676_v45 = vadd.f32 %v4888_v58, %v1664_v8  ;;  %v1677_v27 = vadd.f32 %v4888_v58, %v1665_v33  ;;  %v4973_v17 = vld [vmem:[%s5372_s8 + $0x10] sm:$0xff]  ;;  %v4980_v32 = vld [vmem:[%s5372_s8 + $0x8] sm:$0xff]  ;;  %v4986_v33 = vld [vmem:[%s5372_s8] sm:$0xff] }
 0x76a   :  { %v1694_v2 = vrot.slane %v1673_v35, 7  ;;  %v1678_v0 = vadd.f32 %v4888_v58, %v1666_v9  ;;  %v1679_v4 = vadd.f32 %v4888_v58, %v1667_v37  ;;  %v1991_v8 = vmul.f32 0.03125, %v1989_v59 }
 0x76b   :  { %v1696_v3 = vrot.slane %v1674_v38, 6  ;;  %v1698_v6 = vrot.slane %v1675_v44, 5  ;;  %v1700_v22 = vrot.slane %v1676_v45, 4  ;;  %v1702_v23 = vrot.slane %v1677_v27, 3 }
 0x76c   :  { %v1695_v5 = vsel %vm93_vm0, %v1694_v2, %v1672_v1  ;;  %v1704_v28 = vrot.slane %v1678_v0, 2  ;;  %v1706_v42 = vrot.slane %v1679_v4, 1  ;;  %v1993_v9 = vadd.f32 1e-05, %v1991_v8 }
 0x76d   :  { %v1697_v20 = vsel %vm96_vm1, %v1696_v3, %v1695_v5 }
 0x76e   :  { %v1699_v13 = vsel %vm99_vm2, %v1698_v6, %v1697_v20  ;;  %4175 = vrsqrt.f32 %v1993_v9 }
 0x76f   :  { %v1701_v30 = vsel %vm102_vm3, %v1700_v22, %v1699_v13 }
 0x770   :  { %v1703_v29 = vsel %vm105_vm4, %v1702_v23, %v1701_v30 }
 0x771   :  { %v1705_v60 = vsel %vm108_vm5, %v1704_v28, %v1703_v29 }
 0x772   :  { %v1707_v10 = vsel %vm111_vm6, %v1706_v42, %v1705_v60 }
 0x773   :  { %3992 = vmatmul.mubr.msk.f32.vlgmr.msra.gmra.mxu0 %vm114_vm7, %v1707_v10 }
 0x774   :  { %4014 = vmatpush3.msra.mxu0 %v4437_v63  ;;  %4021 = vmatprep.mubr.msk.f32.mxu0 %vm4254_vm8, %v4253_v14  ;;  %v4938_v63 = vld [vmem:[%s5372_s8 + $0x38] sm:$0xff] }
 0x775   :  { %4015 = vmatprep.subr.mxu0 %v4253_v14  ;;  %3995 = vmatpush3.msra.mxu1 %v4938_v63 }
 0x776   :  { %4016 = vmatpush3.msra.mxu0 %v4447_v16  ;;  %3996 = vmatprep.subr.mxu1 %v4253_v14  ;;  %v4945_v16 = vld [vmem:[%s5372_s8 + $0x30] sm:$0xff] }
 0x777   :  { %4017 = vmatprep.subr.mxu0 %v4253_v14  ;;  %3997 = vmatpush3.msra.mxu1 %v4945_v16 }
 0x778   :  { %4018 = vmatpush3.msra.mxu0 %v4458_v19  ;;  %3998 = vmatprep.subr.mxu1 %v4253_v14  ;;  %v4952_v19 = vld [vmem:[%s5372_s8 + $0x28] sm:$0xff] }
 0x779   :  { %4019 = vmatprep.subr.mxu0 %v4253_v14  ;;  %3999 = vmatpush3.msra.mxu1 %v4952_v19 }
 0x77a   :  { %4020 = vmatpush3.msra.mxu0 %v4469_v21  ;;  %4000 = vmatprep.subr.mxu1 %v4253_v14  ;;  %v4959_v21 = vld [vmem:[%s5372_s8 + $0x20] sm:$0xff] }
 0x77b   :  { %4024 = vmatprep.subr.mxu0 %v4253_v14  ;;  %4001 = vmatpush3.msra.mxu1 %v4959_v21  ;;  %v4176_v44 = vpop.eup %4175 }
 0x77c   :  { %4002 = vmatprep.subr.mxu1 %v4253_v14  ;;  %v2004_v45 = vrot.slane %v4176_v44, 7 }
 0x77d   :  { %4003 = vmatpush3.msra.mxu1 %v4966_v31 }
 0x77e   :  { %4004 = vmatprep.subr.mxu1 %v4253_v14  ;;  %v2020_v4 = vmul.f32 %v2004_v45, %v4797_v43 }
 0x77f   :  { %4005 = vmatpush3.msra.mxu1 %v4973_v17 }
 0x780   :  { %4006 = vmatprep.subr.mxu1 %v4253_v14 }
 0x781   :  { %4007 = vmatpush3.msra.mxu1 %v4980_v32 }
 0x782   :  { %4008 = vmatprep.subr.mxu1 %v4253_v14 }
 0x783   :  { %4009 = vmatpush3.msra.mxu1 %v4986_v33 }
 0x784   :  { %4035 = vmatprep.subr.mxu1 %v4253_v14 }
 0x7ee   :  { %v1986_v37 = vpop.xlane.xlu0 %1985 }
 0x7ef   :  { %v1990_v35 = vmul.f32 0.03125, %v1986_v37 }
 0x7f1   :  { %v1992_v38 = vadd.f32 1e-05, %v1990_v35 }
 0x7f3   :  { %4177 = vrsqrt.f32 %v1992_v38 }
 0x800   :  { %v4178_v1 = vpop.eup %4177 }
 0x801   :  { %v1998_v27 = vrot.slane %v4178_v1, 1  ;;  %v1999_v2 = vrot.slane %v4178_v1, 2  ;;  %v2000_v0 = vrot.slane %v4178_v1, 3  ;;  %v2001_v3 = vrot.slane %v4178_v1, 4 }
 0x802   :  { %v2002_v5 = vrot.slane %v4178_v1, 5  ;;  %v2003_v6 = vrot.slane %v4178_v1, 6  ;;  %v2013_v20 = vmul.f32 %v4178_v1, %v4844_v39 }
 0x803   :  { %v2014_v22 = vmul.f32 %v1998_v27, %v4847_v61  ;;  %v2015_v13 = vmul.f32 %v1999_v2, %v4850_v12  ;;  %v2016_v23 = vmul.f32 %v2000_v0, %v4853_v62  ;;  %v2017_v30 = vmul.f32 %v2001_v3, %v4856_v11 }
 0x804   :  { %v2018_v28 = vmul.f32 %v2002_v5, %v4859_v7  ;;  %v2019_v29 = vmul.f32 %v2003_v6, %v4862_v18  ;;  %v2021_v42 = vmul.f32 %v2013_v20, %v4494_v40  ;;  %v2028_v12 = vmul.f32 %v2020_v4, %v4494_v40 }
 0x805   :  { %v2022_v43 = vmul.f32 %v2014_v22, %v4494_v40  ;;  %v2023_v60 = vmul.f32 %v2015_v13, %v4494_v40  ;;  %v2024_v39 = vmul.f32 %v2016_v23, %v4494_v40  ;;  %v2025_v61 = vmul.f32 %v2017_v30, %v4494_v40  ;;  %v4208_v13 = vld [vmem:[%s5366_s2 + $0x30] sm:$0xff]  ;;  %v4209_v23 = vld [vmem:[%s5366_s2 + $0x28] sm:$0xff]  ;;  %v4210_v30 = vld [vmem:[%s5366_s2 + $0x20] sm:$0xff] }
 0x806   :  { %v2026_v62 = vmul.f32 %v2018_v28, %v4494_v40  ;;  %v2027_v11 = vmul.f32 %v2019_v29, %v4494_v40  ;;  %v2029_v7 = vadd.f32 %v2021_v42, %v4497_v41  ;;  %v2036_v45 = vadd.f32 %v2028_v12, %v4497_v41 }
 0x807   :  { %v2030_v18 = vadd.f32 %v2022_v43, %v4497_v41  ;;  %v2031_v10 = vadd.f32 %v2023_v60, %v4497_v41  ;;  %v2032_v59 = vadd.f32 %v2024_v39, %v4497_v41  ;;  %v2033_v8 = vadd.f32 %v2025_v61, %v4497_v41 }
 0x808   :  { %v2034_v9 = vadd.f32 %v2026_v62, %v4497_v41  ;;  %v2045_v37 = vrot.slane %v2029_v7, 1  ;;  %v2035_v35 = vadd.f32 %v2027_v11, %v4497_v41  ;;  %v2057_v6 = vrot.slane %v2036_v45, 2  ;;  %v4207_v41 = vld [vmem:[%s5366_s2 + $0x38] sm:$0xff] }
 0x809   :  { %v2047_v38 = vrot.slane %v2031_v10, 7  ;;  %v2049_v44 = vrot.slane %v2032_v59, 6  ;;  %v2051_v27 = vrot.slane %v2033_v8, 5  ;;  %v4257_v45 = vmov -1.0  }
 0x80a   :  { %v2046_v40 = vsel %vm93_vm0, %v2030_v18, %v2045_v37  ;;  %v2053_v0 = vrot.slane %v2034_v9, 4  ;;  %v2055_v4 = vrot.slane %v2035_v35, 3 }
 0x80b   :  { %v2048_v1 = vsel %vm96_vm1, %v2047_v38, %v2046_v40 }
 0x80c   :  { %v2050_v2 = vsel %vm99_vm2, %v2049_v44, %v2048_v1 }
 0x80d   :  { %v2052_v3 = vsel %vm102_vm3, %v2051_v27, %v2050_v2 }
 0x80e   :  { %v2054_v5 = vsel %vm105_vm4, %v2053_v0, %v2052_v3  ;;  %v4211_v3 = vld [vmem:[%s5366_s2 + $0x58] sm:$0xff] }
 0x80f   :  { %v2056_v20 = vsel %vm108_vm5, %v2055_v4, %v2054_v5  ;;  %v4212_v4 = vld [vmem:[%s5366_s2 + $0x50] sm:$0xff]  ;;  %v4213_v5 = vld [vmem:[%s5366_s2 + $0x48] sm:$0xff] }
 0x810   :  { %v5022_v22 = vsel %vm111_vm6, %v2057_v6, %v2056_v20  ;;  %v4214_v6 = vld [vmem:[%s5366_s2 + $0x40] sm:$0xff] }
 0x811   :  { %4022 = vmatmul.mubr.msk.f32.vlgmr.msra.gmra.mxu0 %vm114_vm7, %v5022_v22 }
 0x812   :  { %4025 = vmatpush3.msra.mxu0 %v4207_v41  ;;  %4032 = vmatprep.mubr.msk.f32.mxu0 %vm4254_vm8, %v4253_v14  ;;  %v4215_v41 = vld [vmem:[%s5367_s3] ss:$0 sm:$0xff] }
 0x813   :  { %4026 = vmatprep.subr.mxu0 %v4253_v14 }
 0x814   :  { %4027 = vmatpush3.msra.mxu0 %v4208_v13 }
 0x815   :  { %4028 = vmatprep.subr.mxu0 %v4253_v14 }
 0x816   :  { %4029 = vmatpush3.msra.mxu0 %v4209_v23 }
 0x817   :  { %4030 = vmatprep.subr.mxu0 %v4253_v14 }
 0x818   :  { %4031 = vmatpush3.msra.mxu0 %v4210_v30 }
 0x819   :  { %4033 = vmatmul.mubr.msk.f32.vlgmr.msra.gmra.mxu0 %vm114_vm7, %v5022_v22  ;;  %4046 = vmatprep.subr.mxu0 %v4253_v14 }
 0x81a   :  { %4047 = vmatpush3.msra.mxu0 %v4535_v47  ;;  %4054 = vmatprep.mubr.msk.f32.mxu0 %vm4254_vm8, %v4253_v14  ;;  %v5063_v47 = vld [vmem:[%s5371_s7] ss:$0 sm:$0xff] }
 0x81b   :  { %4048 = vmatprep.subr.mxu0 %v4253_v14 }
 0x81c   :  { %4049 = vmatpush3.msra.mxu0 %v4546_v50 }
 0x81d   :  { %4050 = vmatprep.subr.mxu0 %v4253_v14 }
 0x81e   :  { %4051 = vmatpush3.msra.mxu0 %v4557_v52 }
 0x81f   :  { %4052 = vmatprep.subr.mxu0 %v4253_v14 }
 0x820   :  { %4053 = vmatpush3.msra.mxu0 %v4569_v54 }
 0x821   :  { %4055 = vmatmul.mubr.msk.f32.vlgmr.msra.gmra.mxu0 %vm114_vm7, %v5022_v22  ;;  %4067 = vmatprep.subr.mxu0 %v4253_v14 }
 0x822   :  { %4069 = vmatprep.mubr.msk.f32.mxu0 %vm4254_vm8, %v4253_v14 }
 0x833   :  { %v1776_v50 = vpop.f32.mrf.mxu0 }
 0x834   :  { %v1777_v52 = vadd.f32 %v5063_v47, %v1776_v50 }
 0x835   :  { %v3993_v28 = vpop.f32.mrf.mxu0 }
 0x836   :  { %v1781_v29 = vmul.f32 0.70710677, %v1777_v52  ;;  %v1780_v27 = vmul.f32 0.5, %v1777_v52 }
 0x838   :  { %v1784_v42 = vand.u32 2147483647, %v1781_v29  ;;  %vm1782_vm12 = vcmp.ge.f32.partialorder %v1781_v29, 0.0  ;;  %v4217_v29 = vld [vmem:[%s5367_s3 + $0x3] ss:$0 sm:$0xff] }
 0x839   :  { %v1783_v40 = vsel %vm1782_vm12, 1.0, %v4257_v45 }
 0x83a   :  { %v1785_v54 = vmul.f32 0.3275911, %v1784_v42  ;;  %v1797_v60 = vsub.f32 0.0, %v1784_v42 }
 0x83c   :  { %v1786_v43 = vadd.f32 1.0, %v1785_v54  ;;  %v1798_v39 = vmul.f32 %v1797_v60, %v1784_v42 }
 0x83e   :  { %4179 = vrcp.f32 %v1786_v43  ;;  %v1799_v62 = vmul.f32 1.442695, %v1798_v39 }
 0x840   :  { %4181 = vpow2.f32 %v1799_v62 }
 0x84b   :  { %v4180_v61 = vpop.eup %4179 }
 0x84c   :  { %v1788_v12 = vmul.f32 1.0614054, %v4180_v61 }
 0x84d   :  { %v4182_v35 = vpop.eup %4181 }
 0x84e   :  { %v1789_v11 = vadd.f32 -1.4531521, %v1788_v12 }
 0x850   :  { %v1790_v7 = vmul.f32 %v4180_v61, %v1789_v11 }
 0x852   :  { %v1791_v18 = vadd.f32 1.4214138, %v1790_v7 }
 0x854   :  { %v1792_v10 = vmul.f32 %v4180_v61, %v1791_v18 }
 0x856   :  { %v1793_v59 = vadd.f32 -0.28449672, %v1792_v10 }
 0x858   :  { %v1794_v8 = vmul.f32 %v4180_v61, %v1793_v59 }
 0x85a   :  { %v1795_v9 = vadd.f32 0.2548296, %v1794_v8 }
 0x85c   :  { %v1796_v37 = vmul.f32 %v4180_v61, %v1795_v9  ;;  %v4218_v61 = vld [vmem:[%s5367_s3 + $0x2] ss:$0 sm:$0xff] }
 0x85e   :  { %v1801_v38 = vmul.f32 %v4182_v35, %v1796_v37 }
 0x860   :  { %v1802_v44 = vsub.f32 1.0, %v1801_v38 }
 0x862   :  { %v1803_v1 = vmul.f32 %v1802_v44, %v1783_v40 }
 0x864   :  { %v1804_v2 = vadd.f32 1.0, %v1803_v1 }
 0x866   :  { %v1805_v0 = vmul.f32 %v1804_v2, %v1780_v27 }
 0x868   :  { %4011 = vmatmul.mubr.msk.f32.vlgmr.msra.gmra.mxu1 %vm1812_vm13, %v1805_v0 }
 0x869   :  { %4036 = vmatpush3.msra.mxu1 %v4211_v3  ;;  %4043 = vmatprep.mubr.msk.f32.mxu1 %vm4254_vm8, %v4253_v14 }
 0x86a   :  { %4037 = vmatprep.subr.mxu1 %v4253_v14 }
 0x86b   :  { %4038 = vmatpush3.msra.mxu1 %v4212_v4 }
 0x86c   :  { %4039 = vmatprep.subr.mxu1 %v4253_v14 }
 0x86d   :  { %4040 = vmatpush3.msra.mxu1 %v4213_v5 }
 0x86e   :  { %4041 = vmatprep.subr.mxu1 %v4253_v14 }
 0x86f   :  { %4042 = vmatpush3.msra.mxu1 %v4214_v6 }
 0x870   :  { %4044 = vmatmul.mubr.msk.f32.vlgmr.msra.gmra.mxu1 %vm114_vm7, %v5022_v22  ;;  %4057 = vmatprep.subr.mxu1 %v4253_v14  ;;  %v4216_v22 = vld [vmem:[%s5367_s3 + $0x1] ss:$0 sm:$0xff] }
 0x871   :  { %4059 = vmatprep.mubr.msk.f32.mxu1 %vm4254_vm8, %v4253_v14 }
 0x8d1   :  { %v2127_v20 = vpop.f32.mrf.mxu0 }
 0x8d2   :  { %v5093_v13 = vadd.f32 %v4215_v41, %v2127_v20 }
 0x8d3   :  { %v4023_v23 = vpop.f32.mrf.mxu0 }
 0x8d4   :  { %2342 = vrot.lane.b32.xlu0 %v5093_v13, %s4255_s26 }
 0x8d9   :  { %v2197_v30 = vpop.f32.mrf.mxu0 }
 0x8da   :  { %v5100_v50 = vadd.f32 %v4216_v22, %v2197_v30 }
 0x8db   :  { %v4034_v52 = vpop.f32.mrf.mxu0 }
 0x8dc   :  { %2419 = vrot.lane.b32.xlu1 %v5100_v50, %s4255_s26 }
 0x8e1   :  { %v2337_v28 = vpop.f32.mrf.mxu0 }
 0x8e2   :  { %v5107_v42 = vadd.f32 %v4217_v29, %v2337_v28 }
 0x8e3   :  { %v4056_v54 = vpop.f32.mrf.mxu0 }
 0x8e4   :  { %2573 = vrot.lane.b32.xlu0 %v5107_v42, %s4255_s26 }
 0x928   :  { %v5111_v43 = vpop.f32.mrf.mxu1 }
 0x92a   :  { %v4012_v60 = vpop.f32.mrf.mxu1 }
 0x930   :  { %v2267_v39 = vpop.f32.mrf.mxu1 }
 0x931   :  { %v2268_v12 = vadd.f32 %v4218_v61, %v2267_v39 }
 0x932   :  { %v4045_v62 = vpop.f32.mrf.mxu1 }
 0x933   :  { %2496 = vrot.lane.b32.xlu1 %v2268_v12, %s4255_s26 }
 0x946   :  { %v2343_v11 = vpop.permute.xlu0 %2342 }
 0x947   :  { %4058 = vmatpush3.xpose.msk.msra.mxu1 %vm560_vm9, %v2343_v11 }
 0x948   :  { %4062 = vmatprep.subr.mxu1 %v4253_v14 }
 0x94a   :  { %4060 = vmatmul.mubr.msk.f32.vlgmr.msra.gmra.mxu1 %vm560_vm9, %v5093_v13 }
 0x94b   :  { %4064 = vmatprep.mubr.msk.f32.mxu1 %vm4254_vm8, %v4253_v14 }
 0x94e   :  { %v2420_v7 = vpop.permute.xlu1 %2419 }
 0x94f   :  { %4063 = vmatpush3.xpose.msk.msra.mxu1 %vm560_vm9, %v2420_v7 }
 0x950   :  { %4072 = vmatprep.subr.mxu1 %v4253_v14 }
 0x952   :  { %4065 = vmatmul.mubr.msk.f32.vlgmr.msra.gmra.mxu1 %vm560_vm9, %v5100_v50 }
 0x953   :  { %4074 = vmatprep.mubr.msk.f32.mxu1 %vm4254_vm8, %v4253_v14 }
 0x956   :  { %v2574_v18 = vpop.permute.xlu0 %2573 }
 0x957   :  { %4073 = vmatpush3.xpose.msk.msra.mxu1 %vm560_vm9, %v2574_v18 }
 0x958   :  { %4082 = vmatprep.subr.mxu1 %v4253_v14 }
 0x95a   :  { %4075 = vmatmul.mubr.msk.f32.vlgmr.msra.gmra.mxu1 %vm560_vm9, %v5107_v42 }
 0x95b   :  { %4084 = vmatprep.mubr.msk.f32.mxu1 %vm4254_vm8, %v4253_v14 }
 0x9a5   :  { %v2497_v10 = vpop.permute.xlu1 %2496 }
 0x9a6   :  { %4068 = vmatpush3.xpose.msk.msra.mxu0 %vm560_vm9, %v2497_v10 }
 0x9a7   :  { %4077 = vmatprep.subr.mxu0 %v4253_v14 }
 0x9a9   :  { %4070 = vmatmul.mubr.msk.f32.vlgmr.msra.gmra.mxu0 %vm560_vm9, %v2268_v12 }
 0x9aa   :  { %4079 = vmatprep.mubr.msk.f32.mxu0 %vm4254_vm8, %v4253_v14 }
 0xa0a   :  { %v2414_v59 = vpop.f32.mrf.mxu1 }
 0xa0b   :  { %v2649_v8 = vsel %vm560_vm9, %v2414_v59, -inf }
 0xa0c   :  { %v4061_v9 = vpop.f32.mrf.mxu1  ;;  %2650 = vmax.xlane.f32.xlu1 %v2649_v8 }
 0xa12   :  { %v2491_v37 = vpop.f32.mrf.mxu1 }
 0xa13   :  { %v2652_v35 = vsel %vm560_vm9, %v2491_v37, -inf }
 0xa14   :  { %v4066_v38 = vpop.f32.mrf.mxu1  ;;  %2653 = vmax.xlane.f32.xlu0 %v2652_v35 }
 0xa1a   :  { %v2645_v44 = vpop.f32.mrf.mxu1 }
 0xa1b   :  { %v2658_v40 = vsel %vm560_vm9, %v2645_v44, -inf }
 0xa1c   :  { %2659 = vmax.xlane.f32.xlu1 %v2658_v40  ;;  %v4076_v1 = vpop.f32.mrf.mxu1 }
 0xa69   :  { %v2568_v27 = vpop.f32.mrf.mxu0 }
 0xa6a   :  { %v2655_v2 = vsel %vm560_vm9, %v2568_v27, -inf }
 0xa6b   :  { %2656 = vmax.xlane.f32.xlu0 %v2655_v2  ;;  %v4071_v0 = vpop.f32.mrf.mxu0 }
 0xa6c   :  { %v4219_v0 = vld [vmem:[%s5368_s4] sm:$0xff] }
 0xa95   :  { %v2651_v3 = vpop.xlane.xlu1 %2650 }
 0xa96   :  { %v2661_v4 = vsub.f32 %v2414_v59, %v2651_v3 }
 0xa98   :  { %v2665_v5 = vmul.f32 1.442695, %v2661_v4  ;;  %v4220_v4 = vld [vmem:[%s5368_s4 + $0x10] sm:$0xff] }
 0xa9a   :  { %4183 = vpow2.f32 %v2665_v5 }
 0xa9d   :  { %v2654_v6 = vpop.xlane.xlu0 %2653 }
 0xa9e   :  { %v2662_v20 = vsub.f32 %v2491_v37, %v2654_v6 }
 0xaa0   :  { %v2667_v41 = vmul.f32 1.442695, %v2662_v20  ;;  %v4221_v20 = vld [vmem:[%s5368_s4 + $0x18] sm:$0xff] }
 0xaa2   :  { %4185 = vpow2.f32 %v2667_v41 }
 0xaa5   :  { %v2660_v23 = vpop.xlane.xlu1 %2659 }
 0xaa6   :  { %v2664_v30 = vsub.f32 %v2645_v44, %v2660_v23 }
 0xaa7   :  { %v4184_v22 = vpop.eup %4183 }
 0xaa8   :  { %v2671_v52 = vmul.f32 1.442695, %v2664_v30  ;;  %v2673_v28 = vsel %vm560_vm9, %v4184_v22, 0.0 }
 0xaa9   :  { %2674 = vadd.xlane.f32.xlu0 %v2673_v28 }
 0xaaa   :  { %4187 = vpow2.f32 %v2671_v52 }
 0xaaf   :  { %v4186_v29 = vpop.eup %4185 }
 0xab0   :  { %v2676_v54 = vsel %vm560_vm9, %v4186_v29, 0.0 }
 0xab1   :  { %2677 = vadd.xlane.f32.xlu1 %v2676_v54 }
 0xab7   :  { %v4188_v60 = vpop.eup %4187 }
 0xab8   :  { %v2682_v39 = vsel %vm560_vm9, %v4188_v60, 0.0 }
 0xab9   :  { %2683 = vadd.xlane.f32.xlu1 %v2682_v39 }
 0xabf   :  { %2693 = vrot.lane.b32.xlu0 %v5093_v13, %s4256_s30 }
 0xaca   :  { %2769 = vrot.lane.b32.xlu1 %v5100_v50, %s4256_s30 }
 0xace   :  { %2845 = vrot.lane.b32.xlu1 %v2268_v12, %s4256_s30 }
 0xaf4   :  { %v2657_v61 = vpop.xlane.xlu0 %2656 }
 0xaf5   :  { %v2663_v62 = vsub.f32 %v2568_v27, %v2657_v61 }
 0xaf7   :  { %v2669_v11 = vmul.f32 1.442695, %v2663_v62 }
 0xaf9   :  { %4189 = vpow2.f32 %v2669_v11 }
 0xb06   :  { %v4190_v7 = vpop.eup %4189 }
 0xb07   :  { %v2679_v18 = vsel %vm560_vm9, %v4190_v7, 0.0 }
 0xb08   :  { %2680 = vadd.xlane.f32.xlu0 %v2679_v18 }
 0xb1e   :  { %2921 = vrot.lane.b32.xlu0 %v5107_v42, %s4256_s30 }
 0xb32   :  { %v2675_v10 = vpop.xlane.xlu0 %2674 }
 0xb33   :  { %4191 = vrcp.f32 %v2675_v10  ;;  %v4223_v10 = vld [vmem:[%s5364_s0 + $0x2] sm:$0x3] }
 0xb36   :  { %v2694_v59 = vpop.permute.xlu0 %2693 }
 0xb37   :  { %4078 = vmatpush3.msra.mxu0 %v2694_v59 }
 0xb38   :  { %4087 = vmatprep.subr.mxu0 %v4253_v14 }
 0xb3a   :  { %v2678_v13 = vpop.xlane.xlu1 %2677 }
 0xb3b   :  { %4193 = vrcp.f32 %v2678_v13  ;;  %v4224_v13 = vld [vmem:[%s5364_s0 + $0xe] sm:$0x3] }
 0xb40   :  { %v4192_v50 = vpop.eup %4191 }
 0xb41   :  { %v2689_v12 = vmul.f32 %v4192_v50, %v4184_v22 }
 0xb42   :  { %v2684_v8 = vpop.xlane.xlu1 %2683 }
 0xb43   :  { %4080 = vmatmul.mubr.msk.f32.vlgmr.msra.gmra.mxu0 %vm560_vm9, %v2689_v12  ;;  %4195 = vrcp.f32 %v2684_v8  ;;  %v4225_v12 = vld [vmem:[%s5364_s0] sm:$0x3] }
 0xb44   :  { %4089 = vmatprep.mubr.msk.f32.mxu0 %vm4254_vm8, %v4253_v14 }
 0xb46   :  { %v2770_v9 = vpop.permute.xlu1 %2769 }
 0xb47   :  { %4083 = vmatpush3.msra.mxu1 %v2770_v9  ;;  %v4226_v9 = vld [vmem:[%s5364_s0 + $0x4] sm:$0x3] }
 0xb48   :  { %v4194_v37 = vpop.eup %4193  ;;  %4092 = vmatprep.subr.mxu1 %v4253_v14 }
 0xb49   :  { %v2690_v42 = vmul.f32 %v4194_v37, %v4186_v29 }
 0xb4a   :  { %v2846_v35 = vpop.permute.xlu1 %2845 }
 0xb4b   :  { %4085 = vmatmul.mubr.msk.f32.vlgmr.msra.gmra.mxu1 %vm560_vm9, %v2690_v42  ;;  %4088 = vmatpush3.msra.mxu0 %v2846_v35  ;;  %v4227_v42 = vld [vmem:[%s5364_s0 + $0x6] sm:$0x3] }
 0xb4c   :  { %4094 = vmatprep.mubr.msk.f32.mxu1 %vm4254_vm8, %v4253_v14  ;;  %4097 = vmatprep.subr.mxu0 %v4253_v14 }
 0xb50   :  { %v4196_v44 = vpop.eup %4195 }
 0xb51   :  { %v2692_v1 = vmul.f32 %v4196_v44, %v4188_v60 }
 0xb91   :  { %v2681_v38 = vpop.xlane.xlu0 %2680 }
 0xb92   :  { %4197 = vrcp.f32 %v2681_v38  ;;  %v4228_v38 = vld [vmem:[%s5364_s0 + $0x8] sm:$0x3] }
 0xb95   :  { %v2922_v40 = vpop.permute.xlu0 %2921 }
 0xb96   :  { %4093 = vmatpush3.msra.mxu1 %v2922_v40  ;;  %v4229_v40 = vld [vmem:[%s5364_s0 + $0xa] sm:$0x3] }
 0xb97   :  { %4095 = vmatmul.mubr.msk.f32.vlgmr.msra.gmra.mxu1 %vm560_vm9, %v2692_v1  ;;  %4102 = vmatprep.subr.mxu1 %v4253_v14 }
 0xb98   :  { %4103 = vmatpush3.msra.mxu1 %v4667_v49  ;;  %4104 = vmatprep.mubr.msk.f32.mxu1 %vm4254_vm8, %v4253_v14 }
 0xb99   :  { %4112 = vmatprep.subr.mxu1 %v4253_v14 }
 0xb9f   :  { %v4198_v27 = vpop.eup %4197 }
 0xba0   :  { %v2691_v2 = vmul.f32 %v4198_v27, %v4190_v7 }
 0xba2   :  { %4090 = vmatmul.mubr.msk.f32.vlgmr.msra.gmra.mxu0 %vm560_vm9, %v2691_v2 }
 0xba3   :  { %4098 = vmatpush3.msra.mxu0 %v4219_v0  ;;  %4099 = vmatprep.mubr.msk.f32.mxu0 %vm4254_vm8, %v4253_v14  ;;  %v4230_v0 = vld [vmem:[%s5364_s0 + $0xc] sm:$0x3] }
 0xba4   :  { %4107 = vmatprep.subr.mxu0 %v4253_v14 }
 0xc03   :  { %v2765_v49 = vpop.f32.mrf.mxu0 }
 0xc04   :  { %4100 = vmatmul.mubr.msk.f32.vlgmr.msra.gmra.mxu0 %vm560_vm9, %v2765_v49 }
 0xc05   :  { %v4081_v3 = vpop.f32.mrf.mxu0  ;;  %4108 = vmatpush3.msra.mxu0 %v4220_v4  ;;  %4109 = vmatprep.mubr.msk.f32.mxu0 %vm4254_vm8, %v4253_v14 }
 0xc06   :  { %4117 = vmatprep.subr.mxu0 %v4253_v14 }
 0xc0b   :  { %v2841_v5 = vpop.f32.mrf.mxu1 }
 0xc0c   :  { %4105 = vmatmul.mubr.msk.f32.vlgmr.msra.gmra.mxu1 %vm560_vm9, %v2841_v5 }
 0xc0d   :  { %v4086_v6 = vpop.f32.mrf.mxu1  ;;  %4113 = vmatpush3.msra.mxu1 %v4221_v20  ;;  %4114 = vmatprep.mubr.msk.f32.mxu1 %vm4254_vm8, %v4253_v14 }
 0xc0e   :  { %4128 = vmatprep.subr.mxu1 %v4253_v14 }
 0xc57   :  { %v2993_v41 = vpop.f32.mrf.mxu1 }
 0xc58   :  { %4115 = vmatmul.mubr.msk.f32.vlgmr.msra.gmra.mxu1 %vm560_vm9, %v2993_v41 }
 0xc59   :  { %v4096_v23 = vpop.f32.mrf.mxu1  ;;  %4129 = vmatpush3.msra.mxu1 %v4938_v63  ;;  %4144 = vmatprep.mubr.msk.f32.mxu1 %vm4254_vm8, %v4253_v14 }
 0xc5a   :  { %4130 = vmatprep.subr.mxu1 %v4253_v14 }
 0xc5b   :  { %4131 = vmatpush3.msra.mxu1 %v4945_v16 }
 0xc5c   :  { %4132 = vmatprep.subr.mxu1 %v4253_v14 }
 0xc5d   :  { %4133 = vmatpush3.msra.mxu1 %v4952_v19 }
 0xc5e   :  { %4134 = vmatprep.subr.mxu1 %v4253_v14 }
 0xc5f   :  { %4135 = vmatpush3.msra.mxu1 %v4959_v21 }
 0xc60   :  { %4136 = vmatprep.subr.mxu1 %v4253_v14 }
 0xc61   :  { %4137 = vmatpush3.msra.mxu1 %v4966_v31 }
 0xc62   :  { %v2917_v63 = vpop.f32.mrf.mxu0  ;;  %4138 = vmatprep.subr.mxu1 %v4253_v14 }
 0xc63   :  { %4110 = vmatmul.mubr.msk.f32.vlgmr.msra.gmra.mxu0 %vm560_vm9, %v2917_v63  ;;  %4139 = vmatpush3.msra.mxu1 %v4973_v17 }
 0xc64   :  { %v4091_v16 = vpop.f32.mrf.mxu0  ;;  %4118 = vmatpush3.msra.mxu0 %v4818_v24  ;;  %4125 = vmatprep.mubr.msk.f32.mxu0 %vm4254_vm8, %v4253_v14 }
 0xc65   :  { %4119 = vmatprep.subr.mxu0 %v4253_v14  ;;  %4140 = vmatprep.subr.mxu1 %v4253_v14 }
 0xc66   :  { %4120 = vmatpush3.msra.mxu0 %v4823_v25  ;;  %4141 = vmatpush3.msra.mxu1 %v4980_v32 }
 0xc67   :  { %4121 = vmatprep.subr.mxu0 %v4253_v14  ;;  %4142 = vmatprep.subr.mxu1 %v4253_v14 }
 0xc68   :  { %4122 = vmatpush3.msra.mxu0 %v4830_v15  ;;  %4143 = vmatpush3.msra.mxu1 %v4986_v33 }
 0xc69   :  { %4123 = vmatprep.subr.mxu0 %v4253_v14 }
 0xc6a   :  { %4124 = vmatpush3.msra.mxu0 %v4837_v26  ;;  %v4222_v26 = vld [vmem:[%s5369_s5] ss:$0 sm:$0xff] }
 0xcc4   :  { %v3066_v24 = vpop.f32.mrf.mxu0 }
 0xcc5   :  { %v3289_v31 = vsel %vm114_vm7, %v3066_v24, 0.0 }
 0xcc6   :  { %v4101_v19 = vpop.f32.mrf.mxu0 }
 0xccc   :  { %v3139_v21 = vpop.f32.mrf.mxu1 }
 0xccd   :  { %v3290_v25 = vsel %vm114_vm7, %v3139_v21, 0.0 }
 0xcce   :  { %v3291_v17 = vadd.f32 %v3290_v25, %v3289_v31  ;;  %v4106_v32 = vpop.f32.mrf.mxu1 }
 0xd18   :  { %v3285_v30 = vpop.f32.mrf.mxu1 }
 0xd19   :  { %v3294_v14 = vsel %vm114_vm7, %v3285_v30, 0.0 }
 0xd1a   :  { %v4116_v22 = vpop.f32.mrf.mxu1 }
 0xd23   :  { %v3212_v52 = vpop.f32.mrf.mxu0 }
 0xd24   :  { %v3292_v15 = vsel %vm114_vm7, %v3212_v52, 0.0 }
 0xd25   :  { %v3293_v28 = vadd.f32 %v3292_v15, %v3291_v17  ;;  %v4111_v33 = vpop.f32.mrf.mxu0 }
 0xd27   :  { %v3295_v29 = vadd.f32 %v3294_v14, %v3293_v28 }
 0xd29   :  { %v3296_v54 = vadd.f32 %v4222_v26, %v3295_v29 }
 0xd2b   :  { %v3304_v60 = vrot.slane %v3296_v54, 6  ;;  %v3298_v39 = vrot.slane %v3296_v54, 7  ;;  %v3299_v61 = vrot.slane %v3296_v54, 1  ;;  %v3300_v62 = vrot.slane %v3296_v54, 2 }
 0xd2c   :  { %v3301_v11 = vrot.slane %v3296_v54, 3  ;;  %v3302_v7 = vrot.slane %v3296_v54, 4  ;;  %v3303_v18 = vrot.slane %v3296_v54, 5  ;;  %v5229_v59 = vadd.f32 %v4223_v10, %v3296_v54 }
 0xd2d   :  { %v5234_v50 = vadd.f32 %v4224_v13, %v3304_v60  ;;  %v5239_v8 = vadd.f32 %v4225_v12, %v3298_v39  ;;  %v5244_v37 = vadd.f32 %v4226_v9, %v3299_v61  ;;  %v5249_v35 = vadd.f32 %v4227_v42, %v3300_v62 }
 0xd2e   :  { %v5254_v44 = vadd.f32 %v4228_v38, %v3301_v11  ;;  %v5259_v1 = vadd.f32 %v4229_v40, %v3302_v7  ;;  %v3329_v27 = vrot.slane %v5229_v59, 7  ;;  %v5266_v49 = vadd.f32 %v4230_v0, %v3303_v18 }
 0xd2f   :  { %v3341_v2 = vrot.slane %v5234_v50, 1  ;;  %v3331_v3 = vrot.slane %v5244_v37, 6  ;;  %v3333_v4 = vrot.slane %v5249_v35, 5 }
 0xd30   :  { %v3330_v5 = vsel %vm96_vm1, %v3329_v27, %v5239_v8  ;;  %v3335_v41 = vrot.slane %v5254_v44, 4  ;;  %v3337_v63 = vrot.slane %v5259_v1, 3  ;;  %v3339_v24 = vrot.slane %v5266_v49, 2 }
 0xd31   :  { %v3347_v6 = vsel %vm1922_vm10, %v3341_v2, 0.0  ;;  %v3332_v20 = vsel %vm99_vm2, %v3331_v3, %v3330_v5 }
 0xd32   :  { %3348 = vadd.xlane.f32.xlu0 %v3347_v6  ;;  %v3334_v23 = vsel %vm102_vm3, %v3333_v4, %v3332_v20 }
 0xd33   :  { %v3336_v16 = vsel %vm105_vm4, %v3335_v41, %v3334_v23 }
 0xd34   :  { %v3338_v19 = vsel %vm108_vm5, %v3337_v63, %v3336_v16 }
 0xd35   :  { %v3340_v21 = vsel %vm111_vm6, %v3339_v24, %v3338_v19 }
 0xd36   :  { %v3344_v31 = vsel %vm1918_vm11, %v3340_v21, 0.0 }
 0xd37   :  { %3345 = vadd.xlane.f32.xlu1 %v3344_v31 }
 0xdbb   :  { %v3349_v25 = vpop.xlane.xlu0 %3348 }
 0xdbc   :  { %v3351_v17 = vmul.f32 0.03125, %v3349_v25 }
 0xdbe   :  { %v3360_v32 = vrot.slane %v3351_v17, 7 }
 0xdc0   :  { %v3376_v30 = vsub.f32 %v5234_v50, %v3360_v32  ;;  %v3346_v22 = vpop.xlane.xlu1 %3345 }
 0xdc1   :  { %v3350_v52 = vmul.f32 0.03125, %v3346_v22 }
 0xdc2   :  { %v3384_v15 = vmul.f32 %v3376_v30, %v3376_v30 }
 0xdc3   :  { %v3354_v28 = vrot.slane %v3350_v52, 1  ;;  %v3355_v33 = vrot.slane %v3350_v52, 2  ;;  %v3356_v14 = vrot.slane %v3350_v52, 3  ;;  %v3357_v29 = vrot.slane %v3350_v52, 4 }
 0xdc4   :  { %v3405_v26 = vrot.slane %v3384_v15, 1  ;;  %v3358_v54 = vrot.slane %v3350_v52, 5  ;;  %v3359_v60 = vrot.slane %v3350_v52, 6  ;;  %v3369_v39 = vsub.f32 %v5239_v8, %v3350_v52 }
 0xdc5   :  { %v3370_v61 = vsub.f32 %v5229_v59, %v3354_v28  ;;  %v3371_v62 = vsub.f32 %v5244_v37, %v3355_v33  ;;  %v3372_v11 = vsub.f32 %v5249_v35, %v3356_v14  ;;  %v3373_v7 = vsub.f32 %v5254_v44, %v3357_v29 }
 0xdc6   :  { %v3411_v18 = vsel %vm1922_vm10, %v3405_v26, 0.0  ;;  %v3374_v10 = vsub.f32 %v5259_v1, %v3358_v54  ;;  %v3375_v13 = vsub.f32 %v5266_v49, %v3359_v60  ;;  %v3377_v40 = vmul.f32 %v3369_v39, %v3369_v39 }
 0xdc7   :  { %3412 = vadd.xlane.f32.xlu1 %v3411_v18  ;;  %v3378_v12 = vmul.f32 %v3370_v61, %v3370_v61  ;;  %v3379_v9 = vmul.f32 %v3371_v62, %v3371_v62  ;;  %v3380_v42 = vmul.f32 %v3372_v11, %v3372_v11  ;;  %v3381_v38 = vmul.f32 %v3373_v7, %v3373_v7 }
 0xdc8   :  { %v3382_v27 = vmul.f32 %v3374_v10, %v3374_v10  ;;  %v3383_v3 = vmul.f32 %v3375_v13, %v3375_v13 }
 0xdc9   :  { %v3393_v2 = vrot.slane %v3378_v12, 7  ;;  %v3395_v0 = vrot.slane %v3379_v9, 6  ;;  %v3397_v5 = vrot.slane %v3380_v42, 5  ;;  %v3399_v20 = vrot.slane %v3381_v38, 4 }
 0xdca   :  { %v3401_v23 = vrot.slane %v3382_v27, 3  ;;  %v3403_v16 = vrot.slane %v3383_v3, 2 }
 0xdcb   :  { %v3394_v4 = vsel %vm96_vm1, %v3393_v2, %v3377_v40 }
 0xdcc   :  { %v3396_v6 = vsel %vm99_vm2, %v3395_v0, %v3394_v4 }
 0xdcd   :  { %v3398_v41 = vsel %vm102_vm3, %v3397_v5, %v3396_v6 }
 0xdce   :  { %v3400_v63 = vsel %vm105_vm4, %v3399_v20, %v3398_v41 }
 0xdcf   :  { %v3402_v24 = vsel %vm108_vm5, %v3401_v23, %v3400_v63 }
 0xdd0   :  { %v3404_v19 = vsel %vm111_vm6, %v3403_v16, %v3402_v24 }
 0xdd1   :  { %v3408_v21 = vsel %vm1918_vm11, %v3404_v19, 0.0 }
 0xdd2   :  { %3409 = vadd.xlane.f32.xlu0 %v3408_v21 }
 0xe50   :  { %v3413_v31 = vpop.xlane.xlu1 %3412 }
 0xe51   :  { %v3415_v25 = vmul.f32 0.03125, %v3413_v31 }
 0xe53   :  { %v3417_v17 = vadd.f32 1e-05, %v3415_v25 }
 0xe55   :  { %4199 = vrsqrt.f32 %v3417_v17 }
 0xe5b   :  { %v3410_v32 = vpop.xlane.xlu0 %3409 }
 0xe5c   :  { %v3414_v22 = vmul.f32 0.03125, %v3410_v32 }
 0xe5e   :  { %v3416_v52 = vadd.f32 1e-05, %v3414_v22 }
 0xe60   :  { %4201 = vrsqrt.f32 %v3416_v52 }
 0xe62   :  { %v4200_v15 = vpop.eup %4199 }
 0xe63   :  { %v3428_v28 = vrot.slane %v4200_v15, 7 }
 0xe65   :  { %v3444_v60 = vmul.f32 %v3428_v28, %v3376_v30 }
 0xe67   :  { %v3452_v30 = vmul.f32 %v3444_v60, %v4885_v46 }
 0xe69   :  { %v3460_v19 = vadd.f32 %v3452_v30, %v4888_v58 }
 0xe6b   :  { %v3481_v15 = vrot.slane %v3460_v19, 2 }
 0xe6d   :  { %v4202_v33 = vpop.eup %4201 }
 0xe6e   :  { %v3422_v14 = vrot.slane %v4202_v33, 1  ;;  %v3423_v29 = vrot.slane %v4202_v33, 2  ;;  %v3424_v26 = vrot.slane %v4202_v33, 3  ;;  %v3425_v54 = vrot.slane %v4202_v33, 4 }
 0xe6f   :  { %v3426_v18 = vrot.slane %v4202_v33, 5  ;;  %v3427_v12 = vrot.slane %v4202_v33, 6  ;;  %v3437_v9 = vmul.f32 %v4202_v33, %v3369_v39 }
 0xe70   :  { %v3438_v42 = vmul.f32 %v3422_v14, %v3370_v61  ;;  %v3439_v38 = vmul.f32 %v3423_v29, %v3371_v62  ;;  %v3440_v40 = vmul.f32 %v3424_v26, %v3372_v11  ;;  %v3441_v27 = vmul.f32 %v3425_v54, %v3373_v7 }
 0xe71   :  { %v3442_v2 = vmul.f32 %v3426_v18, %v3374_v10  ;;  %v3443_v0 = vmul.f32 %v3427_v12, %v3375_v13  ;;  %v3445_v3 = vmul.f32 %v3437_v9, %v4885_v46 }
 0xe72   :  { %v3446_v4 = vmul.f32 %v3438_v42, %v4885_v46  ;;  %v3447_v5 = vmul.f32 %v3439_v38, %v4885_v46  ;;  %v3448_v6 = vmul.f32 %v3440_v40, %v4885_v46  ;;  %v3449_v20 = vmul.f32 %v3441_v27, %v4885_v46 }
 0xe73   :  { %v3450_v39 = vmul.f32 %v3442_v2, %v4885_v46  ;;  %v3451_v61 = vmul.f32 %v3443_v0, %v4885_v46  ;;  %v3453_v62 = vadd.f32 %v3445_v3, %v4888_v58 }
 0xe74   :  { %v3454_v11 = vadd.f32 %v3446_v4, %v4888_v58  ;;  %v3455_v7 = vadd.f32 %v3447_v5, %v4888_v58  ;;  %v3456_v10 = vadd.f32 %v3448_v6, %v4888_v58  ;;  %v3457_v13 = vadd.f32 %v3449_v20, %v4888_v58 }
 0xe75   :  { %v3458_v41 = vadd.f32 %v3450_v39, %v4888_v58  ;;  %v3469_v23 = vrot.slane %v3453_v62, 1  ;;  %v3459_v63 = vadd.f32 %v3451_v61, %v4888_v58 }
 0xe76   :  { %v3471_v16 = vrot.slane %v3455_v7, 7  ;;  %v3473_v24 = vrot.slane %v3456_v10, 6  ;;  %v3475_v31 = vrot.slane %v3457_v13, 5  ;;  %v3739_v13 = vld [vmem:[%s5373_s9] ss:$0 sm:$0xff]  ;;  %s4258_s9 = smov [#allocation2]  }
 0xe77   :  { %v3470_v46 = vsel %vm93_vm0, %v3454_v11, %v3469_v23  ;;  %v3477_v17 = vrot.slane %v3458_v41, 4  ;;  %v3479_v22 = vrot.slane %v3459_v63, 3  ;;  %v1883_v41 = vadd.f32 %v3739_v13, %v5111_v43  ;;  %s3701_s8 = sshll.u32 %s4258_s9, 4  ;;  %s3702_s8 = int_to_ptr.vmem [resolvable:$true] %s3701_s8 }
 0xe78   :  { %v3472_v21 = vsel %vm96_vm1, %v3471_v16, %v3470_v46  ;;  %vm3687_vm0 = vcmask 254976   ;;  %s4231_s25 = scalar_lea.vmem %s3702_s8, 256  ;;  %p4236_p1 = scmp.lt.s32.totalorder %s3702_s8, %s3702_s8 }
 0xe79   :  { %v3474_v25 = vsel %vm99_vm2, %v3473_v24, %v3472_v21  ;;  %v1887_v23 = vrot.slane %v1883_v41, 1  ;;  %v1888_v63 = vrot.slane %v1883_v41, 2  ;;  %v1889_v16 = vrot.slane %v1883_v41, 3  ;;  %p4232_p0 = scmp.ne.s32.totalorder %s3702_s8, %s4231_s25  ;;  %p4237_p2 = scmp.lt.s32.totalorder %s4231_s25, %s4231_s25 }
 0xe7a   :  { %v3476_v32 = vsel %vm102_vm3, %v3475_v31, %v3474_v25  ;;  %v1890_v24 = vrot.slane %v1883_v41, 4  ;;  %v1891_v19 = vrot.slane %v1883_v41, 5  ;;  %v1892_v46 = vrot.slane %v1883_v41, 6 }
 0xe7b   :  { %v3478_v52 = vsel %vm105_vm4, %v3477_v17, %v3476_v32  ;;  %v1893_v21 = vrot.slane %v1883_v41, 7  ;;  %v1903_v31 = vadd.f32 %v1887_v23, %v4699_v48  ;;  %v1904_v25 = vadd.f32 %v1888_v63, %v4702_v51  ;;  %p4238_p3 = por %p4237_p2, %p4236_p1 }
 0xe7c   :  { %v3480_v28 = vsel %vm108_vm5, %v3479_v22, %v3478_v52  ;;  %v1905_v32 = vadd.f32 %v1889_v16, %v4705_v53  ;;  %v1906_v22 = vadd.f32 %v1890_v24, %v4708_v55  ;;  %v1907_v43 = vadd.f32 %v1891_v19, %v4714_v57 }
 0xe7d   :  { %v3482_v33 = vsel %vm111_vm6, %v3481_v15, %v3480_v28  ;;  %v1908_v15 = vadd.f32 %v1892_v46, %v4719_v34  ;;  %v1909_v28 = vadd.f32 %v1893_v21, %v4722_v36  ;;  %p4239_p4 = pnand %p4238_p3, %p4232_p0 }
 0xe7e   :  { %4126 = vmatmul.mubr.msk.f32.vlgmr.msra.gmra.mxu0 %vm114_vm7, %v3482_v33 }
 0xf3e   :  { %v3551_v58 = vpop.f32.mrf.mxu0 }
 0xf3f   :  { %v3552_v14 = vadd.f32 %v5063_v47, %v3551_v58 }
 0xf40   :  { %v4127_v29 = vpop.f32.mrf.mxu0 }
 0xf41   :  { %v3556_v26 = vmul.f32 0.70710677, %v3552_v14  ;;  %v3555_v11 = vmul.f32 0.5, %v3552_v14 }
 0xf43   :  { %v3559_v54 = vand.u32 2147483647, %v3556_v26  ;;  %vm3557_vm14 = vcmp.ge.f32.partialorder %v3556_v26, 0.0 }
 0xf44   :  { %v3558_v61 = vsel %vm3557_vm14, 1.0, %v4257_v45  ;;  %v1902_v45 = vadd.f32 %v1883_v41, %v4711_v56 }
 0xf45   :  { %v3560_v60 = vmul.f32 0.3275911, %v3559_v54  ;;  %v3572_v12 = vsub.f32 0.0, %v3559_v54 }
 0xf47   :  { %v3561_v18 = vadd.f32 1.0, %v3560_v60  ;;  %v3573_v9 = vmul.f32 %v3572_v12, %v3559_v54 }
 0xf49   :  { %4203 = vrcp.f32 %v3561_v18  ;;  %v3574_v40 = vmul.f32 1.442695, %v3573_v9 }
 0xf4b   :  { %4205 = vpow2.f32 %v3574_v40 }
 0xf56   :  { %v4204_v42 = vpop.eup %4203 }
 0xf57   :  { %v3563_v38 = vmul.f32 1.0614054, %v4204_v42 }
 0xf58   :  { %v4206_v20 = vpop.eup %4205 }
 0xf59   :  { %v3564_v27 = vadd.f32 -1.4531521, %v3563_v38 }
 0xf5b   :  { %v3565_v2 = vmul.f32 %v4204_v42, %v3564_v27 }
 0xf5d   :  { %v3566_v0 = vadd.f32 1.4214138, %v3565_v2 }
 0xf5f   :  { %v3567_v3 = vmul.f32 %v4204_v42, %v3566_v0 }
 0xf61   :  { %v3568_v4 = vadd.f32 -0.28449672, %v3567_v3 }
 0xf63   :  { %v3569_v5 = vmul.f32 %v4204_v42, %v3568_v4 }
 0xf65   :  { %v3570_v6 = vadd.f32 0.2548296, %v3569_v5 }
 0xf67   :  { %v3571_v47 = vmul.f32 %v4204_v42, %v3570_v6 }
 0xf69   :  { %v3576_v30 = vmul.f32 %v4206_v20, %v3571_v47 }
 0xf6b   :  { %v3577_v39 = vsub.f32 1.0, %v3576_v30 }
 0xf6d   :  { %v3578_v62 = vmul.f32 %v3577_v39, %v3558_v61 }
 0xf6f   :  { %v3579_v7 = vadd.f32 1.0, %v3578_v62 }
 0xf71   :  { %v3580_v10 = vmul.f32 %v3579_v7, %v3555_v11 }
 0xf73   :  { %4145 = vmatmul.mubr.msk.f32.vlgmr.msra.gmra.mxu1 %vm1812_vm13, %v3580_v10 }
0x1033   :  { %v3650_v17 = vpop.f32.mrf.mxu1 }
0x1034   :  { %v3651_v52 = vadd.f32 %v3739_v13, %v3650_v17 }
0x1035   :  { %v4146_v33 = vpop.f32.mrf.mxu1 }
0x1036   :  { %v3655_v56 = vrot.slane %v3651_v52, 7  ;;  %v3656_v58 = vrot.slane %v3651_v52, 1  ;;  %v3657_v48 = vrot.slane %v3651_v52, 2  ;;  %v3658_v14 = vrot.slane %v3651_v52, 3 }
0x1037   :  { %v3659_v51 = vrot.slane %v3651_v52, 4  ;;  %v3660_v53 = vrot.slane %v3651_v52, 5  ;;  %v3661_v29 = vrot.slane %v3651_v52, 6  ;;  %v3671_v55 = vadd.f32 %v3651_v52, %v5229_v59 }
0x1038   :  { %v3670_v57 = vadd.f32 %v3655_v56, %v5239_v8  ;;  %v3672_v34 = vadd.f32 %v3656_v58, %v5244_v37  ;;  %v3673_v36 = vadd.f32 %v3657_v48, %v5249_v35  ;;  %v3674_v26 = vadd.f32 %v3658_v14, %v5254_v44 }
0x1039   :  { %v3675_v54 = vadd.f32 %v3659_v51, %v5259_v1  ;;  %v3676_v60 = vadd.f32 %v3660_v53, %v5266_v49  ;;  %v3677_v18 = vadd.f32 %v3661_v29, %v5234_v50  ;;  %v3680_v12 = vsel %vm3678_vm15, %v1903_v31, %v3671_v55 }
0x103a   :  { %v3679_v9 = vsel %vm3678_vm15, %v1902_v45, %v3670_v57  ;;  %v3681_v59 = vsel %vm3678_vm15, %v1904_v25, %v3672_v34  ;;  %v3682_v8 = vsel %vm3678_vm15, %v1905_v32, %v3673_v36  ;;  %v3683_v37 = vsel %vm3678_vm15, %v1906_v22, %v3674_v26  ;;  %3689 = vst.msk [vmem:[#allocation2 + $0x2] sm:$0x3] %vm3687_vm0, %v3680_v12 }
0x103b   :  { %v3684_v35 = vsel %vm3678_vm15, %v1907_v43, %v3675_v54  ;;  %v3685_v44 = vsel %vm3678_vm15, %v1908_v15, %v3676_v60  ;;  %v3686_v1 = vsel %vm3678_vm15, %v1909_v28, %v3677_v18  ;;  %3688 = vst.msk [vmem:[#allocation2] sm:$0x3] %vm3687_vm0, %v3679_v9  ;;  %3690 = vst.msk [vmem:[#allocation2 + $0x4] sm:$0x3] %vm3687_vm0, %v3681_v59 }
0x103c   :  { %3691 = vst.msk [vmem:[#allocation2 + $0x6] sm:$0x3] %vm3687_vm0, %v3682_v8  ;;  %3692 = vst.msk [vmem:[#allocation2 + $0x8] sm:$0x3] %vm3687_vm0, %v3683_v37 }
0x103d   :  { %3693 = vst.msk [vmem:[#allocation2 + $0xa] sm:$0x3] %vm3687_vm0, %v3684_v35  ;;  %3694 = vst.msk [vmem:[#allocation2 + $0xc] sm:$0x3] %vm3687_vm0, %v3685_v44 }
0x103e   :  { %3695 = vst.msk [vmem:[#allocation2 + $0xe] sm:$0x3] %vm3687_vm0, %v3686_v1 }
0x103f   :  { %4242 = shalt.err (!%p4239_p4)
}
0x1040   :  { %s4259_s1 = smov 32   ;;  %s4260_s3 = smov 2  }
0x1041   :  { %3707 = dma.vmem_to_hbm [thread:$0]  %s3702_s8, 256, %s5374_s10, [#allocation3], %s4259_s1, %s4259_s1, %s4260_s3  }
0x1042   :  { %4251 = dma.done.wait [#allocation3], 256  }
0x1043   :  { %4252 = vsyncadd [#allocation3], 4294967040 }
0x1044   :  { %3711 = vsyncpa [#allocation3], 1 }

</bundles_post_ra>
